<compile_context>
chip_gen: v7x
topology: tpu7x:2x2x1
jax: 0.10.0
libtpu: 0.0.40
codegen_flags: <defaults>
</compile_context>

<pallas_src>
import functools

import jax
import jax.numpy as jnp
from jax.experimental import pallas as pl
from jax.experimental.pallas import tpu as pltpu

LATENT_DIM = 32      # small stand-in for 256
H_DIM = 64           # small stand-in for 1024
N_CONTROL = 2        # forward() hardcodes g.view(-1, 2)
BATCH = 256          # batched grid (per-row independent QP keeps semantics)
BATCH_TILE = 128     # rows per grid step (fills MXU rows)
OUT_W = 128          # lane-padded fused output width: [f(32)|g0(32)|g1(32)|pad(32)]


def idbf_kernel(x_ref, uref_ref,
                w1_ref, b1_ref, w2_ref, b2_ref, w3_ref, b3_ref,
                out_ref):
    bf16 = jnp.bfloat16
    x = x_ref[...]                                   # (BT, L)  f32
    uref = uref_ref[...]                             # (BT, NC) f32

    # Fused f/g trunk: three lane-dense matmuls (bf16 operands, f32 accumulate).
    h = jnp.tanh(jnp.dot(x.astype(bf16), w1_ref[...],
                         preferred_element_type=jnp.float32) + b1_ref[...])
    h = jnp.tanh(jnp.dot(h.astype(bf16), w2_ref[...],
                         preferred_element_type=jnp.float32) + b2_ref[...])
    fg = jnp.dot(h.astype(bf16), w3_ref[...],
                 preferred_element_type=jnp.float32) + b3_ref[...]   # (BT, 128)

    # barrier b(x) = 1 - ||x||^2, analytic gradient d_b = -2x (all f32 / VPU).
    b_val = 1.0 - jnp.sum(x * x, axis=-1, keepdims=True)            # (BT, 1)
    d_b = -2.0 * x                                                   # (BT, L)

    L = LATENT_DIM
    f = fg[:, 0:L]                                                   # (BT, L)
    t1 = jnp.sum(d_b * f, axis=-1, keepdims=True)                    # (BT, 1)

    t2_cols = []
    t2_dot_uref = jnp.zeros_like(t1)
    t2_sq = jnp.zeros_like(t1)
    for c in range(N_CONTROL):
        gc = fg[:, L * (1 + c):L * (2 + c)]                          # (BT, L)
        t2c = jnp.sum(d_b * gc, axis=-1, keepdims=True)              # (BT, 1)
        t2_cols.append(t2c)
        t2_dot_uref = t2_dot_uref + t2c * uref[:, c:c + 1]
        t2_sq = t2_sq + t2c * t2c

    # Closed-form CBF-QP: project u_ref onto {u : t2.u + (t1+t3) >= 0}.
    viol = t1 + t2_dot_uref + b_val                                  # (BT, 1)
    lam = jnp.maximum(0.0, -viol) / jnp.maximum(t2_sq, 1e-12)        # (BT, 1)
    res = lam * lam * t2_sq                                          # ||u-u_ref||^2

    # Pack [u_0, u_1, res, 0...] into one lane-dense (BT, 128) slab -> one store.
    bt, ow = out_ref.shape
    cols = jax.lax.broadcasted_iota(jnp.int32, (bt, ow), 1)
    packed = jnp.where(cols == N_CONTROL, res, 0.0)
    for c in range(N_CONTROL):
        u_c = uref[:, c:c + 1] + lam * t2_cols[c]
        packed = packed + jnp.where(cols == c, u_c, 0.0)
    out_ref[...] = packed


def init_params(key, latent=LATENT_DIM, h=H_DIM, nc=N_CONTROL):
    """Deterministic synthetic weights (Glorot-ish scaling), f32 masters."""
    def lin(k, fan_in, fan_out):
        kw, kb = jax.random.split(k)
        s = 1.0 / jnp.sqrt(fan_in)
        w = jax.random.uniform(kw, (fan_in, fan_out), jnp.float32, -s, s)
        b = jax.random.uniform(kb, (1, fan_out), jnp.float32, -s, s)
        return w, b

    ks = jax.random.split(key, 6)
    w1f, b1f = lin(ks[0], latent, h)
    w2f, b2f = lin(ks[1], h, h)
    w3f, b3f = lin(ks[2], h, latent)
    w1g, b1g = lin(ks[3], latent, h)
    w2g, b2g = lin(ks[4], h, h)
    w3g, b3g = lin(ks[5], h, latent * nc)   # flat index = l*nc + c (== .view(-1, nc))
    return dict(w1f=w1f, b1f=b1f, w2f=w2f, b2f=b2f, w3f=w3f, b3f=b3f,
                w1g=w1g, b1g=b1g, w2g=w2g, b2g=b2g, w3g=w3g, b3g=b3g)


def fuse_params(p):
    """One-time fusion: lane-dense fused/block-diagonal weights, bf16 weights, f32 biases."""
    L, H, NC = LATENT_DIM, H_DIM, N_CONTROL
    H2 = 2 * H

    w1 = jnp.concatenate([p["w1f"], p["w1g"]], axis=1)                 # (L, 2H)
    b1 = jnp.concatenate([p["b1f"], p["b1g"]], axis=1)                 # (1, 2H)

    w2 = jnp.zeros((H2, H2), jnp.float32)
    w2 = w2.at[:H, :H].set(p["w2f"]).at[H:, H:].set(p["w2g"])          # block-diag
    b2 = jnp.concatenate([p["b2f"], p["b2g"]], axis=1)                 # (1, 2H)

    w3 = jnp.zeros((H2, OUT_W), jnp.float32)
    b3 = jnp.zeros((1, OUT_W), jnp.float32)
    w3 = w3.at[:H, :L].set(p["w3f"])
    b3 = b3.at[:, :L].set(p["b3f"])
    for c in range(NC):   # regroup g columns per control channel (done once, not per call)
        w3 = w3.at[H:, L * (1 + c):L * (2 + c)].set(p["w3g"][:, c::NC])
        b3 = b3.at[:, L * (1 + c):L * (2 + c)].set(p["b3g"][:, c::NC])

    bf16 = jnp.bfloat16
    return dict(w1=w1.astype(bf16), b1=b1,
                w2=w2.astype(bf16), b2=b2,
                w3=w3.astype(bf16), b3=b3)


def _cost_estimate(batch):
    matmul_flops = 2 * batch * (LATENT_DIM * 2 * H_DIM
                                + (2 * H_DIM) * (2 * H_DIM)
                                + (2 * H_DIM) * OUT_W)
    transcendentals = batch * 4 * H_DIM
    bytes_accessed = (batch * LATENT_DIM * 4 + batch * N_CONTROL * 4
                      + batch * OUT_W * 4
                      + 2 * (LATENT_DIM * 2 * H_DIM + 4 * H_DIM * H_DIM
                             + 2 * H_DIM * OUT_W)
                      + 4 * (2 * 2 * H_DIM + OUT_W))
    return pl.CostEstimate(flops=matmul_flops,
                           transcendentals=transcendentals,
                           bytes_accessed=bytes_accessed)


@functools.partial(jax.jit, static_argnames=())
def idbf_forward(x, u_ref, fused):
    B = x.shape[0]
    assert B % BATCH_TILE == 0, "batch must be a multiple of BATCH_TILE"

    row = lambda b: (b, 0)          # batch-tiled arrays
    const = lambda b: (0, 0)        # VMEM-resident weights (DMA'd once)

    out = pl.pallas_call(
        idbf_kernel,
        grid=(B // BATCH_TILE,),
        in_specs=[
            pl.BlockSpec((BATCH_TILE, LATENT_DIM), row),     # x
            pl.BlockSpec((BATCH_TILE, N_CONTROL), row),      # u_ref
            pl.BlockSpec(fused["w1"].shape, const),
            pl.BlockSpec(fused["b1"].shape, const),
            pl.BlockSpec(fused["w2"].shape, const),
            pl.BlockSpec(fused["b2"].shape, const),
            pl.BlockSpec(fused["w3"].shape, const),
            pl.BlockSpec(fused["b3"].shape, const),
        ],
        out_specs=pl.BlockSpec((BATCH_TILE, OUT_W), row),
        out_shape=jax.ShapeDtypeStruct((B, OUT_W), jnp.float32),
        compiler_params=pltpu.CompilerParams(
            dimension_semantics=("parallel",)),
        cost_estimate=_cost_estimate(B),
    )(x, u_ref, fused["w1"], fused["b1"], fused["w2"], fused["b2"],
      fused["w3"], fused["b3"])

    u_opt = out[:, :N_CONTROL]
    result = out[:, N_CONTROL:N_CONTROL + 1]
    return u_opt, result


def reference_forward(x, u_ref, p):
    """Pure-JAX reference on the ORIGINAL (unfused) params, same bf16 matmul discipline."""
    bf16 = jnp.bfloat16

    def mm(a, w):
        return jnp.dot(a.astype(bf16), w.astype(bf16),
                       preferred_element_type=jnp.float32)

    h = jnp.tanh(mm(x, p["w1f"]) + p["b1f"])
    h = jnp.tanh(mm(h, p["w2f"]) + p["b2f"])
    f = mm(h, p["w3f"]) + p["b3f"]
    hg = jnp.tanh(mm(x, p["w1g"]) + p["b1g"])
    hg = jnp.tanh(mm(hg, p["w2g"]) + p["b2g"])
    g = mm(hg, p["w3g"]) + p["b3g"]                              # (B, L*NC)

    b = 1.0 - jnp.sum(x * x, axis=-1, keepdims=True)
    d_b = -2.0 * x
    g_mat = g.reshape(x.shape[0], LATENT_DIM, N_CONTROL)         # .view(-1, nc) ordering
    t1 = jnp.sum(d_b * f, axis=-1, keepdims=True)
    t2 = jnp.einsum("bl,blc->bc", d_b, g_mat)
    viol = t1 + jnp.sum(t2 * u_ref, axis=-1, keepdims=True) + b
    lam = jnp.maximum(0.0, -viol) / jnp.maximum(
        jnp.sum(t2 * t2, axis=-1, keepdims=True), 1e-12)
    u = u_ref + lam * t2
    res = jnp.sum((u - u_ref) ** 2, axis=-1, keepdims=True)
    return u, res


if __name__ == "__main__":
    key = jax.random.PRNGKey(0)
    k_p, k_x, k_u = jax.random.split(key, 3)

    params = init_params(k_p)
    fused = fuse_params(params)          # one-time param fusion (not per call)

    x = jax.random.normal(k_x, (BATCH, LATENT_DIM), jnp.float32) * 0.5
    u_ref = jax.random.normal(k_u, (BATCH, N_CONTROL), jnp.float32)

    u_opt, result = idbf_forward(x, u_ref, fused)
    jax.block_until_ready((u_opt, result))

    u_exp, res_exp = reference_forward(x, u_ref, params)
    assert u_opt.shape == (BATCH, N_CONTROL) and result.shape == (BATCH, 1)
    assert jnp.allclose(u_opt, u_exp, atol=1e-2, rtol=1e-2), (
        float(jnp.max(jnp.abs(u_opt - u_exp))))
    assert jnp.allclose(result, res_exp, atol=1e-2, rtol=1e-2), (
        float(jnp.max(jnp.abs(result - res_exp))))

    print("KERNEL_OK")
</pallas_src>

<mosaic_0001>
module attributes {stable_mosaic.version = 11 : i64} {
  func.func @idbf_kernel(%arg0: i32, %arg1: memref<128x32xf32, #tpu.memory_space<vmem>>, %arg2: memref<128x2xf32, #tpu.memory_space<vmem>>, %arg3: memref<32x128xbf16, #tpu.memory_space<vmem>>, %arg4: memref<1x128xf32, #tpu.memory_space<vmem>>, %arg5: memref<128x128xbf16, #tpu.memory_space<vmem>>, %arg6: memref<1x128xf32, #tpu.memory_space<vmem>>, %arg7: memref<128x128xbf16, #tpu.memory_space<vmem>>, %arg8: memref<1x128xf32, #tpu.memory_space<vmem>>, %arg9: memref<128x128xf32, #tpu.memory_space<vmem>>) attributes {dimension_semantics = [#tpu.dimension_semantics<parallel>], iteration_bounds = array<i64: 2>, scalar_prefetch = 0 : i64, scratch_operands = 0 : i64, tpu.core_type = #tpu.core_type<tc>, window_params = [{transform_indices = @transform_0, window_bounds = array<i64: 128, 32>}, {transform_indices = @transform_1, window_bounds = array<i64: 128, 2>}, {pipeline_mode = #tpu.pipeline_mode<synchronous>, transform_indices = @transform_2, window_bounds = array<i64: 32, 128>}, {pipeline_mode = #tpu.pipeline_mode<synchronous>, transform_indices = @transform_3, window_bounds = array<i64: 1, 128>}, {pipeline_mode = #tpu.pipeline_mode<synchronous>, transform_indices = @transform_4, window_bounds = array<i64: 128, 128>}, {pipeline_mode = #tpu.pipeline_mode<synchronous>, transform_indices = @transform_5, window_bounds = array<i64: 1, 128>}, {pipeline_mode = #tpu.pipeline_mode<synchronous>, transform_indices = @transform_6, window_bounds = array<i64: 128, 128>}, {pipeline_mode = #tpu.pipeline_mode<synchronous>, transform_indices = @transform_7, window_bounds = array<i64: 1, 128>}, {transform_indices = @transform_8, window_bounds = array<i64: 128, 128>}]} {
    %c0 = arith.constant 0 : index
    %c0_0 = arith.constant 0 : index
    %0 = vector.load %arg1[%c0, %c0_0] : memref<128x32xf32, #tpu.memory_space<vmem>>, vector<128x32xf32>
    %c0_1 = arith.constant 0 : index
    %c0_2 = arith.constant 0 : index
    %1 = vector.load %arg2[%c0_1, %c0_2] : memref<128x2xf32, #tpu.memory_space<vmem>>, vector<128x2xf32>
    %2 = arith.truncf %0 : vector<128x32xf32> to vector<128x32xbf16>
    %c0_3 = arith.constant 0 : index
    %c0_4 = arith.constant 0 : index
    %3 = vector.load %arg3[%c0_3, %c0_4] : memref<32x128xbf16, #tpu.memory_space<vmem>>, vector<32x128xbf16>
    %cst = arith.constant dense<0.000000e+00> : vector<128x128xf32>
    %4 = tpu.matmul %2, %3, %cst {dimension_numbers = #tpu.dot_dimension_numbers<[1], [0], [0], [1], [0, 0, 1, 1], [], []>} : vector<128x32xbf16>, vector<32x128xbf16>, vector<128x128xf32> -> vector<128x128xf32>
    %c0_5 = arith.constant 0 : index
    %c0_6 = arith.constant 0 : index
    %5 = vector.load %arg4[%c0_5, %c0_6] : memref<1x128xf32, #tpu.memory_space<vmem>>, vector<1x128xf32>
    %6 = vector.broadcast %5 : vector<1x128xf32> to vector<128x128xf32>
    %7 = arith.addf %4, %6 : vector<128x128xf32>
    %8 = math.tanh %7 : vector<128x128xf32>
    %9 = arith.truncf %8 : vector<128x128xf32> to vector<128x128xbf16>
    %c0_7 = arith.constant 0 : index
    %c0_8 = arith.constant 0 : index
    %10 = vector.load %arg5[%c0_7, %c0_8] : memref<128x128xbf16, #tpu.memory_space<vmem>>, vector<128x128xbf16>
    %cst_9 = arith.constant dense<0.000000e+00> : vector<128x128xf32>
    %11 = tpu.matmul %9, %10, %cst_9 {dimension_numbers = #tpu.dot_dimension_numbers<[1], [0], [0], [1], [0, 0, 1, 1], [], []>} : vector<128x128xbf16>, vector<128x128xbf16>, vector<128x128xf32> -> vector<128x128xf32>
    %c0_10 = arith.constant 0 : index
    %c0_11 = arith.constant 0 : index
    %12 = vector.load %arg6[%c0_10, %c0_11] : memref<1x128xf32, #tpu.memory_space<vmem>>, vector<1x128xf32>
    %13 = vector.broadcast %12 : vector<1x128xf32> to vector<128x128xf32>
    %14 = arith.addf %11, %13 : vector<128x128xf32>
    %15 = math.tanh %14 : vector<128x128xf32>
    %16 = arith.truncf %15 : vector<128x128xf32> to vector<128x128xbf16>
    %c0_12 = arith.constant 0 : index
    %c0_13 = arith.constant 0 : index
    %17 = vector.load %arg7[%c0_12, %c0_13] : memref<128x128xbf16, #tpu.memory_space<vmem>>, vector<128x128xbf16>
    %cst_14 = arith.constant dense<0.000000e+00> : vector<128x128xf32>
    %18 = tpu.matmul %16, %17, %cst_14 {dimension_numbers = #tpu.dot_dimension_numbers<[1], [0], [0], [1], [0, 0, 1, 1], [], []>} : vector<128x128xbf16>, vector<128x128xbf16>, vector<128x128xf32> -> vector<128x128xf32>
    %c0_15 = arith.constant 0 : index
    %c0_16 = arith.constant 0 : index
    %19 = vector.load %arg8[%c0_15, %c0_16] : memref<1x128xf32, #tpu.memory_space<vmem>>, vector<1x128xf32>
    %20 = vector.broadcast %19 : vector<1x128xf32> to vector<128x128xf32>
    %21 = arith.addf %18, %20 : vector<128x128xf32>
    %22 = arith.mulf %0, %0 : vector<128x32xf32>
    %cst_17 = arith.constant dense<0.000000e+00> : vector<128xf32>
    %23 = vector.multi_reduction <add>, %22, %cst_17 [1] : vector<128x32xf32> to vector<128xf32>
    %24 = vector.shape_cast %23 : vector<128xf32> to vector<128x1xf32>
    %cst_18 = arith.constant 1.000000e+00 : f32
    %25 = vector.broadcast %cst_18 : f32 to vector<128x1xf32>
    %26 = arith.subf %25, %24 : vector<128x1xf32>
    %cst_19 = arith.constant -2.000000e+00 : f32
    %27 = vector.broadcast %cst_19 : f32 to vector<128x32xf32>
    %28 = arith.mulf %27, %0 : vector<128x32xf32>
    %29 = vector.extract_strided_slice %21 {offsets = [0, 0], sizes = [128, 32], strides = [1, 1]} : vector<128x128xf32> to vector<128x32xf32>
    %30 = arith.mulf %28, %29 : vector<128x32xf32>
    %cst_20 = arith.constant dense<0.000000e+00> : vector<128xf32>
    %31 = vector.multi_reduction <add>, %30, %cst_20 [1] : vector<128x32xf32> to vector<128xf32>
    %32 = vector.shape_cast %31 : vector<128xf32> to vector<128x1xf32>
    %cst_21 = arith.constant 0.000000e+00 : f32
    %33 = vector.broadcast %cst_21 : f32 to vector<128x1xf32>
    %cst_22 = arith.constant 0.000000e+00 : f32
    %34 = vector.broadcast %cst_22 : f32 to vector<128x1xf32>
    %35 = vector.extract_strided_slice %21 {offsets = [0, 32], sizes = [128, 32], strides = [1, 1]} : vector<128x128xf32> to vector<128x32xf32>
    %36 = arith.mulf %28, %35 : vector<128x32xf32>
    %cst_23 = arith.constant dense<0.000000e+00> : vector<128xf32>
    %37 = vector.multi_reduction <add>, %36, %cst_23 [1] : vector<128x32xf32> to vector<128xf32>
    %38 = vector.shape_cast %37 : vector<128xf32> to vector<128x1xf32>
    %39 = vector.extract_strided_slice %1 {offsets = [0, 0], sizes = [128, 1], strides = [1, 1]} : vector<128x2xf32> to vector<128x1xf32>
    %40 = arith.mulf %38, %39 : vector<128x1xf32>
    %41 = arith.addf %33, %40 : vector<128x1xf32>
    %42 = arith.mulf %38, %38 : vector<128x1xf32>
    %43 = arith.addf %34, %42 : vector<128x1xf32>
    %44 = vector.extract_strided_slice %21 {offsets = [0, 64], sizes = [128, 32], strides = [1, 1]} : vector<128x128xf32> to vector<128x32xf32>
    %45 = arith.mulf %28, %44 : vector<128x32xf32>
    %cst_24 = arith.constant dense<0.000000e+00> : vector<128xf32>
    %46 = vector.multi_reduction <add>, %45, %cst_24 [1] : vector<128x32xf32> to vector<128xf32>
    %47 = vector.shape_cast %46 : vector<128xf32> to vector<128x1xf32>
    %48 = vector.extract_strided_slice %1 {offsets = [0, 1], sizes = [128, 1], strides = [1, 1]} : vector<128x2xf32> to vector<128x1xf32>
    %49 = arith.mulf %47, %48 : vector<128x1xf32>
    %50 = arith.addf %41, %49 : vector<128x1xf32>
    %51 = arith.mulf %47, %47 : vector<128x1xf32>
    %52 = arith.addf %43, %51 : vector<128x1xf32>
    %53 = arith.addf %32, %50 : vector<128x1xf32>
    %54 = arith.addf %53, %26 : vector<128x1xf32>
    %cst_25 = arith.constant 0.000000e+00 : f32
    %55 = vector.broadcast %cst_25 : f32 to vector<128x1xf32>
    %56 = arith.subf %55, %54 : vector<128x1xf32>
    %cst_26 = arith.constant 0.000000e+00 : f32
    %57 = vector.broadcast %cst_26 : f32 to vector<128x1xf32>
    %58 = arith.maximumf %57, %56 : vector<128x1xf32>
    %cst_27 = arith.constant 9.99999996E-13 : f32
    %59 = vector.broadcast %cst_27 : f32 to vector<128x1xf32>
    %60 = arith.maximumf %52, %59 : vector<128x1xf32>
    %61 = arith.divf %58, %60 : vector<128x1xf32>
    %62 = arith.mulf %61, %61 : vector<128x1xf32>
    %63 = arith.mulf %62, %52 : vector<128x1xf32>
    %64 = tpu.iota {dimensions = array<i32: 1>} : vector<128x128xi32>
    %c2_i32 = arith.constant 2 : i32
    %65 = vector.broadcast %c2_i32 : i32 to vector<128x128xi32>
    %66 = arith.cmpi eq, %64, %65 : vector<128x128xi32>
    %cst_28 = arith.constant 0.000000e+00 : f32
    %67 = vector.shape_cast %63 : vector<128x1xf32> to vector<128x1xf32>
    %68 = vector.broadcast %67 : vector<128x1xf32> to vector<128x128xf32>
    %69 = vector.broadcast %cst_28 : f32 to vector<128x128xf32>
    %70 = arith.select %66, %68, %69 : vector<128x128xi1>, vector<128x128xf32>
    %71 = vector.extract_strided_slice %1 {offsets = [0, 0], sizes = [128, 1], strides = [1, 1]} : vector<128x2xf32> to vector<128x1xf32>
    %72 = arith.mulf %61, %38 : vector<128x1xf32>
    %73 = arith.addf %71, %72 : vector<128x1xf32>
    %c0_i32 = arith.constant 0 : i32
    %74 = vector.broadcast %c0_i32 : i32 to vector<128x128xi32>
    %75 = arith.cmpi eq, %64, %74 : vector<128x128xi32>
    %cst_29 = arith.constant 0.000000e+00 : f32
    %76 = vector.shape_cast %73 : vector<128x1xf32> to vector<128x1xf32>
    %77 = vector.broadcast %76 : vector<128x1xf32> to vector<128x128xf32>
    %78 = vector.broadcast %cst_29 : f32 to vector<128x128xf32>
    %79 = arith.select %75, %77, %78 : vector<128x128xi1>, vector<128x128xf32>
    %80 = arith.addf %70, %79 : vector<128x128xf32>
    %81 = vector.extract_strided_slice %1 {offsets = [0, 1], sizes = [128, 1], strides = [1, 1]} : vector<128x2xf32> to vector<128x1xf32>
    %82 = arith.mulf %61, %47 : vector<128x1xf32>
    %83 = arith.addf %81, %82 : vector<128x1xf32>
    %c1_i32 = arith.constant 1 : i32
    %84 = vector.broadcast %c1_i32 : i32 to vector<128x128xi32>
    %85 = arith.cmpi eq, %64, %84 : vector<128x128xi32>
    %cst_30 = arith.constant 0.000000e+00 : f32
    %86 = vector.shape_cast %83 : vector<128x1xf32> to vector<128x1xf32>
    %87 = vector.broadcast %86 : vector<128x1xf32> to vector<128x128xf32>
    %88 = vector.broadcast %cst_30 : f32 to vector<128x128xf32>
    %89 = arith.select %85, %87, %88 : vector<128x128xi1>, vector<128x128xf32>
    %90 = arith.addf %80, %89 : vector<128x128xf32>
    %c0_31 = arith.constant 0 : index
    %c0_32 = arith.constant 0 : index
    %91 = vector.load %arg9[%c0_31, %c0_32] : memref<128x128xf32, #tpu.memory_space<vmem>>, vector<128x128xf32>
    tpu.vector_store %arg9[%c0_31, %c0_32], %90 {strides = array<i32>} : memref<128x128xf32, #tpu.memory_space<vmem>>, vector<128x128xf32>,
    return
  }
  func.func @transform_0(%arg0: i32) -> (i32, i32) {
    %c0_i32 = arith.constant 0 : i32
    %c0_i32_0 = arith.constant 0 : i32
    return %arg0, %c0_i32 : i32, i32
  }
  func.func @transform_1(%arg0: i32) -> (i32, i32) {
    %c0_i32 = arith.constant 0 : i32
    %c0_i32_0 = arith.constant 0 : i32
    return %arg0, %c0_i32 : i32, i32
  }
  func.func @transform_2(%arg0: i32) -> (i32, i32) {
    %c0_i32 = arith.constant 0 : i32
    %c0_i32_0 = arith.constant 0 : i32
    %c0_i32_1 = arith.constant 0 : i32
    return %c0_i32, %c0_i32_0 : i32, i32
  }
  func.func @transform_3(%arg0: i32) -> (i32, i32) {
    %c0_i32 = arith.constant 0 : i32
    %c0_i32_0 = arith.constant 0 : i32
    %c0_i32_1 = arith.constant 0 : i32
    return %c0_i32, %c0_i32_0 : i32, i32
  }
  func.func @transform_4(%arg0: i32) -> (i32, i32) {
    %c0_i32 = arith.constant 0 : i32
    %c0_i32_0 = arith.constant 0 : i32
    %c0_i32_1 = arith.constant 0 : i32
    return %c0_i32, %c0_i32_0 : i32, i32
  }
  func.func @transform_5(%arg0: i32) -> (i32, i32) {
    %c0_i32 = arith.constant 0 : i32
    %c0_i32_0 = arith.constant 0 : i32
    %c0_i32_1 = arith.constant 0 : i32
    return %c0_i32, %c0_i32_0 : i32, i32
  }
  func.func @transform_6(%arg0: i32) -> (i32, i32) {
    %c0_i32 = arith.constant 0 : i32
    %c0_i32_0 = arith.constant 0 : i32
    %c0_i32_1 = arith.constant 0 : i32
    return %c0_i32, %c0_i32_0 : i32, i32
  }
  func.func @transform_7(%arg0: i32) -> (i32, i32) {
    %c0_i32 = arith.constant 0 : i32
    %c0_i32_0 = arith.constant 0 : i32
    %c0_i32_1 = arith.constant 0 : i32
    return %c0_i32, %c0_i32_0 : i32, i32
  }
  func.func @transform_8(%arg0: i32) -> (i32, i32) {
    %c0_i32 = arith.constant 0 : i32
    %c0_i32_0 = arith.constant 0 : i32
    return %arg0, %c0_i32 : i32, i32
  }
}

</mosaic_0001>

<bundles_post_ra>
// kernel: idbf_forward.1
= control target key start
LH: loop header
LB: loop body
LE: loop exit
PB: predicated region body
PF: predicated region fallthrough
CT: control target
= control target key end

     0   :  { %s2533_s27 = smov 0   ;;  %s3614_s0 = inlined_call_operand.vmem [shape: f32[256,32], index: 0, kind: input, shape index: {}]   ;;  %s3615_s1 = inlined_call_operand.vmem [shape: f32[256,2], index: 1, kind: input, shape index: {}]   ;;  %s3616_s2 = inlined_call_operand.vmem [shape: bf16[32,128], index: 2, kind: input, shape index: {}]   ;;  %s3617_s3 = inlined_call_operand.vmem [shape: f32[1,128], index: 3, kind: input, shape index: {}]   ;;  %s3618_s4 = inlined_call_operand.vmem [shape: bf16[128,128], index: 4, kind: input, shape index: {}]   ;;  %s3619_s5 = inlined_call_operand.vmem [shape: f32[1,128], index: 5, kind: input, shape index: {}]   ;;  %s3620_s6 = inlined_call_operand.vmem [shape: bf16[128,128], index: 6, kind: input, shape index: {}]   ;;  %s3621_s7 = inlined_call_operand.vmem [shape: f32[1,128], index: 7, kind: input, shape index: {}]   ;;  %s3622_s8 = inlined_call_operand.vmem [shape: f32[256,128], index: 8, kind: output, shape index: {}]  }
   0x1 LB: > { %s2174_s28 = sadd.s32 4294967295, %s2480_s27   ;;  %p2178_p0 = scmp.ge.s32.totalorder %s2480_s27, 1  ;;  %s2480_s27 = sphi %s2533_s27, %s18_s27  }
   0x2   : > { %p274_p1 = scmp.lt.s32.totalorder %s2480_s27, 3 }
   0x4   : > { %p275_p2 = pnand %p2178_p0, %p274_p1 }
   0x6   : > { %278 = sbr.rel (%p275_p2) target bundleno = 1592 (0x638), region = 52 }
   0xd   : > { %v2360_v0 = vld [vmem:[%s3616_s2] sm:$0xff]   ;;  %s2179_s9 = sshll.u32 %s2174_s28, 4  ;;  %v2361_v1 = vld [vmem:[%s3616_s2 + $0x8] sm:$0xff]   ;;  %v2364_v4 = vld [vmem:[%s3618_s4 + $0x10] sm:$0xff]   ;;  %vm395_vm0 = vcmask 261120   ;;  %s2482_s13 = smov 96  }
   0xe   : > { %p314_p3 = scmp.lt.s32.totalorder %s2179_s9, 31  ;;  %2258 = vmatprep.subr.bf16.mxu0 %v2360_v0  ;;  %v2362_v2 = vld [vmem:[%s3618_s4] sm:$0xff]   ;;  %v2363_v3 = vld [vmem:[%s3618_s4 + $0x8] sm:$0xff]   ;;  %v2365_v29 = vld [vmem:[%s3618_s4 + $0x18] sm:$0xff]   ;;  %s2483_s14 = smov 64  }
   0xf   : > { %2259 = vmatpush3.bf16.msra.mxu0 %v2360_v0  ;;  %2278 = vmatprep.subr.bf16.mxu1 %v2362_v2  ;;  %v2366_v30 = vld [vmem:[%s3618_s4 + $0x20] sm:$0xff]   ;;  %v2367_v31 = vld [vmem:[%s3618_s4 + $0x28] sm:$0xff]   ;;  %v2368_v32 = vld [vmem:[%s3618_s4 + $0x30] sm:$0xff]   ;;  %s2484_s19 = smov 127   ;;  %s2486_s20 = smov 1  }
  0x10   : > { %s3727_s9 = smov (!%p314_p3, %s2179_s9), 31  ;;  %2260 = vmatprep.subr.bf16.mxu0 %v2361_v1  ;;  %2279 = vmatpush3.bf16.msra.mxu1 %v2362_v2  ;;  %v2369_v33 = vld [vmem:[%s3618_s4 + $0x38] sm:$0xff]   ;;  %v2370_v34 = vld [vmem:[%s3620_s6] sm:$0xff]   ;;  %v2371_v35 = vld [vmem:[%s3620_s6 + $0x8] sm:$0xff]  }
  0x11   : > { %s2553_s16 = sshll.u32 %s3727_s9, 3  ;;  %2280 = vmatprep.subr.bf16.mxu1 %v2363_v3  ;;  %v2372_v36 = vld [vmem:[%s3620_s6 + $0x10] sm:$0xff]   ;;  %v2373_v37 = vld [vmem:[%s3620_s6 + $0x18] sm:$0xff]   ;;  %v2185_v38 = vld [vmem:[%s3617_s3] ss:$0 sm:$0xff] }
  0x12   : > { %s2562_s21 = scalar_lea.vmem %s3614_s0, %s2553_s16  ;;  %s3004_s18 = scalar_lea.vmem %s3615_s1, %s2553_s16 }
  0x13   : > { %2261 = vmatpush3.bf16.msra.mxu0 %v2361_v1  ;;  %v2565_v5 = vld [vmem:[%s2562_s21] sm:$0xff]  ;;  %v2568_v6 = vld [vmem:[%s2562_s21 + $0x8] sm:$0xff]  ;;  %v2571_v7 = vld [vmem:[%s2562_s21 + $0x10] sm:$0xff]  ;;  %s3537_s23 = scalar_lea.vmem %s3622_s8, %s2553_s16 }
  0x14   : > { %v364_v8 = vpack.c.bf16 %v2568_v6, %v2565_v5  ;;  %v2576_v9 = vld [vmem:[%s2562_s21 + $0x18] sm:$0xff]  ;;  %v2579_v10 = vld [vmem:[%s2562_s21 + $0x20] sm:$0xff]  ;;  %v2582_v11 = vld [vmem:[%s2562_s21 + $0x28] sm:$0xff]  ;;  %2281 = vmatpush3.bf16.msra.mxu1 %v2363_v3  ;;  %2310 = vmatprep.subr.bf16.mxu0 %v2370_v34 }
  0x15   : > { %v365_v12 = vpack.c.bf16 %v2576_v9, %v2571_v7  ;;  %v366_v13 = vpack.c.bf16 %v2582_v11, %v2579_v10  ;;  %2282 = vmatprep.subr.bf16.mxu1 %v2364_v4  ;;  %v2591_v14 = vld [vmem:[%s2562_s21 + $0x30] sm:$0xff]  ;;  %v2594_v15 = vld [vmem:[%s2562_s21 + $0x38] sm:$0xff]  ;;  %v2597_v16 = vld [vmem:[%s2562_s21 + $0x40] sm:$0xff] }
  0x16   : > { %2262 = vmatprep.mubr.msk.bf16.mxu0 %vm395_vm0, %v364_v8  ;;  %v2601_v17 = vld [vmem:[%s2562_s21 + $0x48] sm:$0xff]  ;;  %v367_v18 = vpack.c.bf16 %v2594_v15, %v2591_v14  ;;  %v2610_v20 = vld [vmem:[%s2562_s21 + $0x50] sm:$0xff]  ;;  %v2613_v21 = vld [vmem:[%s2562_s21 + $0x58] sm:$0xff] }
  0x17   : > { %2263 = vmatmul.mubr.msk.bf16.vlgmr.msra.gmra.mrb[0].mxu0 %vm395_vm0, %v365_v12  ;;  %v368_v19 = vpack.c.bf16 %v2601_v17, %v2597_v16  ;;  %v2616_v22 = vld [vmem:[%s2562_s21 + $0x60] sm:$0xff]  ;;  %v2619_v23 = vld [vmem:[%s2562_s21 + $0x68] sm:$0xff]  ;;  %v369_v24 = vpack.c.bf16 %v2613_v21, %v2610_v20  ;;  %v2628_v26 = vld [vmem:[%s2562_s21 + $0x70] sm:$0xff] }
  0x18   : > { %2266 = vmatprep.mubr.msk.bf16.mxu0 %vm395_vm0, %v366_v13  ;;  %2283 = vmatpush3.bf16.msra.mxu1 %v2364_v4  ;;  %v370_v25 = vpack.c.bf16 %v2619_v23, %v2616_v22  ;;  %v2631_v27 = vld [vmem:[%s2562_s21 + $0x78] sm:$0xff] }
  0x19   : > { %v371_v28 = vpack.c.bf16 %v2631_v27, %v2628_v26  ;;  %2284 = vmatprep.subr.bf16.mxu1 %v2365_v29  ;;  %2311 = vmatpush3.bf16.msra.mxu0 %v2370_v34 }
  0x1a   : > { %2312 = vmatprep.subr.bf16.mxu0 %v2371_v35 }
  0x1c   : > { %2285 = vmatpush3.bf16.msra.mxu1 %v2365_v29 }
  0x1d   : > { %2286 = vmatprep.subr.bf16.mxu1 %v2366_v30  ;;  %2313 = vmatpush3.bf16.msra.mxu0 %v2371_v35 }
  0x1e   : > { %2314 = vmatprep.subr.bf16.mxu0 %v2372_v36 }
  0x1f   : > { %2267 = vmatmul.mubr.msk.bf16.gmra.mrb[4].mxu0 %vm395_vm0, %v367_v18 }
  0x20   : > { %2270 = vmatprep.mubr.msk.bf16.mxu0 %vm395_vm0, %v368_v19  ;;  %2287 = vmatpush3.bf16.msra.mxu1 %v2366_v30 }
  0x21   : > { %2288 = vmatprep.subr.bf16.mxu1 %v2367_v31  ;;  %2315 = vmatpush3.bf16.msra.mxu0 %v2372_v36 }
  0x22   : > { %2316 = vmatprep.subr.bf16.mxu0 %v2373_v37 }
  0x24   : > { %2289 = vmatpush3.bf16.msra.mxu1 %v2367_v31 }
  0x25   : > { %2290 = vmatprep.subr.bf16.mxu1 %v2368_v32  ;;  %2317 = vmatpush3.bf16.msra.mxu0 %v2373_v37 }
  0x27   : > { %2271 = vmatmul.mubr.msk.bf16.gmra.mrb[8].mxu0 %vm395_vm0, %v369_v24 }
  0x28   : > { %2274 = vmatprep.mubr.msk.bf16.mxu0 %vm395_vm0, %v370_v25  ;;  %2291 = vmatpush3.bf16.msra.mxu1 %v2368_v32 }
  0x29   : > { %2292 = vmatprep.subr.bf16.mxu1 %v2369_v33 }
  0x2c   : > { %2293 = vmatpush3.bf16.msra.mxu1 %v2369_v33 }
  0x2f   : > { %2275 = vmatmul.mubr.msk.bf16.gmra.mrb[12].mxu0 %vm395_vm0, %v371_v28 }
  0xea   : > { %v2264_v39 = vpop.f32.mrb[0].mxu0 }
  0xeb   : > { %v463_v40 = vadd.f32 %v2264_v39, %v2185_v38  ;;  %v454_v41 = vpop.f32.mrb[1].mxu0 }
  0xec   : > { %v455_v42 = vadd.f32 %v2185_v38, %v454_v41  ;;  %v2265_v43 = vpop.f32.mrb[2].mxu0 }
  0xed   : > { %2378 = vtanh.f32 %v463_v40  ;;  %v466_v44 = vadd.f32 %v2265_v43, %v2185_v38  ;;  %v457_v45 = vpop.f32.mrb[3].mxu0 }
  0xee   : > { %2380 = vtanh.f32 %v455_v42  ;;  %v458_v46 = vadd.f32 %v2185_v38, %v457_v45 }
  0xef   : > { %2382 = vtanh.f32 %v466_v44 }
  0xf0   : > { %2384 = vtanh.f32 %v458_v46 }
  0xf2   : > { %v2268_v47 = vpop.f32.mrb[4].mxu0 }
  0xf3   : > { %v479_v48 = vadd.f32 %v2268_v47, %v2185_v38  ;;  %v470_v49 = vpop.f32.mrb[5].mxu0 }
  0xf4   : > { %v471_v50 = vadd.f32 %v2185_v38, %v470_v49  ;;  %v2269_v51 = vpop.f32.mrb[6].mxu0  ;;  %v2376_v49 = vld [vmem:[%s3620_s6 + $0x30] sm:$0xff]  }
  0xf5   : > { %2386 = vtanh.f32 %v479_v48  ;;  %v482_v52 = vadd.f32 %v2269_v51, %v2185_v38  ;;  %v473_v53 = vpop.f32.mrb[7].mxu0  ;;  %v2375_v48 = vld [vmem:[%s3620_s6 + $0x28] sm:$0xff]   ;;  %v903_v51 = vmul.f32 %v2571_v7, %v2571_v7 }
  0xf6   : > { %2388 = vtanh.f32 %v471_v50  ;;  %v474_v54 = vadd.f32 %v2185_v38, %v473_v53  ;;  %v2377_v50 = vld [vmem:[%s3620_s6 + $0x38] sm:$0xff]   ;;  %v904_v53 = vmul.f32 %v2576_v9, %v2576_v9 }
  0xf7   : > { %v2379_v55 = vpop.eup %2378  ;;  %2390 = vtanh.f32 %v482_v52  ;;  %v901_v52 = vmul.f32 %v2565_v5, %v2565_v5 }
  0xf8   : > { %v2381_v56 = vpop.eup %2380  ;;  %2392 = vtanh.f32 %v474_v54  ;;  %v902_v54 = vmul.f32 %v2568_v6, %v2568_v6 }
  0xf9   : > { %v2383_v57 = vpop.eup %2382 }
  0xfa   : > { %v2385_v58 = vpop.eup %2384  ;;  %v534_v59 = vpack.c.bf16 %v2383_v57, %v2379_v55  ;;  %v2272_v60 = vpop.f32.mrb[8].mxu0  ;;  %v923_v55 = vsel %vm395_vm0, %v903_v51, 0.0  ;;  %v926_v57 = vsel %vm395_vm0, %v904_v53, 0.0 }
  0xfb   : > { %v533_v61 = vpack.c.bf16 %v2385_v58, %v2381_v56  ;;  %v495_v62 = vadd.f32 %v2272_v60, %v2185_v38  ;;  %v486_v63 = vpop.f32.mrb[9].mxu0  ;;  %v917_v56 = vsel %vm395_vm0, %v901_v52, 0.0  ;;  %924 = vadd.xlane.f32.xlu1 %v923_v55  ;;  %v920_v58 = vsel %vm395_vm0, %v902_v54, 0.0 }
  0xfc   : > { %v487_v0 = vadd.f32 %v2185_v38, %v486_v63  ;;  %v2273_v1 = vpop.f32.mrb[10].mxu0  ;;  %918 = vadd.xlane.f32.xlu0 %v917_v56  ;;  %v905_v60 = vmul.f32 %v2579_v10, %v2579_v10  ;;  %v908_v63 = vmul.f32 %v2594_v15, %v2594_v15 }
  0xfd   : > { %2294 = vmatprep.mubr.bf16.mxu1 %v533_v61  ;;  %2394 = vtanh.f32 %v495_v62  ;;  %v498_v2 = vadd.f32 %v2273_v1, %v2185_v38  ;;  %v489_v3 = vpop.f32.mrb[11].mxu0 }
  0xfe   : > { %2295 = vmatmul.mubr.bf16.vlgmr.msra.gmra.mrb[0].mxu1 %v534_v59  ;;  %2396 = vtanh.f32 %v487_v0  ;;  %v490_v4 = vadd.f32 %v2185_v38, %v489_v3  ;;  %v906_v59 = vmul.f32 %v2582_v11, %v2582_v11  ;;  %v929_v62 = vsel %vm395_vm0, %v905_v60, 0.0 }
  0xff   : > { %v2387_v8 = vpop.eup %2386  ;;  %2398 = vtanh.f32 %v498_v2  ;;  %927 = vadd.xlane.f32.xlu1 %v926_v57  ;;  %v907_v0 = vmul.f32 %v2591_v14, %v2591_v14  ;;  %v938_v1 = vsel %vm395_vm0, %v908_v63, 0.0  ;;  %v910_v3 = vmul.f32 %v2601_v17, %v2601_v17 }
 0x100   : > { %v2389_v12 = vpop.eup %2388  ;;  %2400 = vtanh.f32 %v490_v4  ;;  %921 = vadd.xlane.f32.xlu0 %v920_v58  ;;  %v932_v61 = vsel %vm395_vm0, %v906_v59, 0.0  ;;  %v909_v4 = vmul.f32 %v2597_v16, %v2597_v16 }
 0x101   : > { %v2391_v13 = vpop.eup %2390  ;;  %v935_v2 = vsel %vm395_vm0, %v907_v0, 0.0 }
 0x102   : > { %v2393_v18 = vpop.eup %2392  ;;  %v536_v19 = vpack.c.bf16 %v2391_v13, %v2387_v8  ;;  %v2276_v24 = vpop.f32.mrb[12].mxu0  ;;  %v944_v8 = vsel %vm395_vm0, %v910_v3, 0.0  ;;  %v912_v13 = vmul.f32 %v2613_v21, %v2613_v21 }
 0x103   : > { %v535_v25 = vpack.c.bf16 %v2393_v18, %v2389_v12  ;;  %v511_v28 = vadd.f32 %v2276_v24, %v2185_v38  ;;  %v502_v29 = vpop.f32.mrb[13].mxu0  ;;  %933 = vadd.xlane.f32.xlu1 %v932_v61  ;;  %v941_v12 = vsel %vm395_vm0, %v909_v4, 0.0  ;;  %v911_v18 = vmul.f32 %v2610_v20, %v2610_v20 }
 0x104   : > { %v503_v30 = vadd.f32 %v2185_v38, %v502_v29  ;;  %v2277_v31 = vpop.f32.mrb[14].mxu0  ;;  %930 = vadd.xlane.f32.xlu0 %v929_v62 }
 0x105   : > { %2298 = vmatprep.mubr.bf16.mxu1 %v535_v25  ;;  %2402 = vtanh.f32 %v511_v28  ;;  %v514_v32 = vadd.f32 %v2277_v31, %v2185_v38  ;;  %v505_v33 = vpop.f32.mrb[15].mxu0  ;;  %v947_v24 = vsel %vm395_vm0, %v911_v18, 0.0  ;;  %v914_v25 = vmul.f32 %v2619_v23, %v2619_v23 }
 0x106   : > { %2299 = vmatmul.mubr.bf16.gmra.mrb[4].mxu1 %v536_v19  ;;  %2404 = vtanh.f32 %v503_v30  ;;  %v506_v34 = vadd.f32 %v2185_v38, %v505_v33  ;;  %v2374_v38 = vld [vmem:[%s3620_s6 + $0x20] sm:$0xff]   ;;  %v950_v19 = vsel %vm395_vm0, %v912_v13, 0.0  ;;  %v913_v28 = vmul.f32 %v2616_v22, %v2616_v22 }
 0x107   : > { %v2395_v35 = vpop.eup %2394  ;;  %2406 = vtanh.f32 %v514_v32  ;;  %2318 = vmatprep.subr.bf16.mxu0 %v2374_v38  ;;  %939 = vadd.xlane.f32.xlu1 %v938_v1  ;;  %v956_v29 = vsel %vm395_vm0, %v914_v25, 0.0  ;;  %v916_v31 = vmul.f32 %v2631_v27, %v2631_v27  ;;  %v915_v32 = vmul.f32 %v2628_v26, %v2628_v26 }
 0x108   : > { %v2397_v36 = vpop.eup %2396  ;;  %2408 = vtanh.f32 %v506_v34  ;;  %2319 = vmatpush3.bf16.msra.mxu0 %v2374_v38  ;;  %936 = vadd.xlane.f32.xlu0 %v935_v2  ;;  %v953_v30 = vsel %vm395_vm0, %v913_v28, 0.0 }
 0x109   : > { %v2399_v37 = vpop.eup %2398  ;;  %2320 = vmatprep.subr.bf16.mxu0 %v2375_v48  ;;  %v962_v33 = vsel %vm395_vm0, %v916_v31, 0.0  ;;  %v959_v34 = vsel %vm395_vm0, %v915_v32, 0.0 }
 0x10a   : > { %v2401_v39 = vpop.eup %2400  ;;  %v538_v40 = vpack.c.bf16 %v2399_v37, %v2395_v35  ;;  %v2196_v35 = vld [vmem:[%s3619_s5] ss:$0 sm:$0xff] }
 0x10b   : > { %v537_v41 = vpack.c.bf16 %v2401_v39, %v2397_v36  ;;  %945 = vadd.xlane.f32.xlu1 %v944_v8 }
 0x10c   : > { %2321 = vmatpush3.bf16.msra.mxu0 %v2375_v48  ;;  %942 = vadd.xlane.f32.xlu0 %v941_v12 }
 0x10d   : > { %2302 = vmatprep.mubr.bf16.mxu1 %v537_v41  ;;  %2322 = vmatprep.subr.bf16.mxu0 %v2376_v49 }
 0x10e   : > { %2303 = vmatmul.mubr.bf16.gmra.mrb[8].mxu1 %v538_v40 }
 0x10f   : > { %v2403_v42 = vpop.eup %2402  ;;  %951 = vadd.xlane.f32.xlu1 %v950_v19 }
 0x110   : > { %v2405_v43 = vpop.eup %2404  ;;  %2323 = vmatpush3.bf16.msra.mxu0 %v2376_v49  ;;  %948 = vadd.xlane.f32.xlu0 %v947_v24 }
 0x111   : > { %v2407_v44 = vpop.eup %2406  ;;  %2324 = vmatprep.subr.bf16.mxu0 %v2377_v50 }
 0x112   : > { %v2409_v45 = vpop.eup %2408  ;;  %v540_v46 = vpack.c.bf16 %v2407_v44, %v2403_v42 }
 0x113   : > { %v539_v47 = vpack.c.bf16 %v2409_v45, %v2405_v43  ;;  %957 = vadd.xlane.f32.xlu1 %v956_v29 }
 0x114   : > { %2325 = vmatpush3.bf16.msra.mxu0 %v2377_v50  ;;  %954 = vadd.xlane.f32.xlu0 %v953_v30 }
 0x115   : > { %2306 = vmatprep.mubr.bf16.mxu1 %v539_v47 }
 0x116   : > { %2307 = vmatmul.mubr.bf16.gmra.mrb[12].mxu1 %v540_v46 }
 0x117   : > { %963 = vadd.xlane.f32.xlu1 %v962_v33 }
 0x118   : > { %960 = vadd.xlane.f32.xlu0 %v959_v34 }
 0x1d1   : > { %v2296_v36 = vpop.f32.mrb[0].mxu1 }
 0x1d2   : > { %v655_v37 = vadd.f32 %v2296_v36, %v2196_v35  ;;  %v646_v39 = vpop.f32.mrb[1].mxu1 }
 0x1d3   : > { %v647_v40 = vadd.f32 %v2196_v35, %v646_v39  ;;  %v2297_v41 = vpop.f32.mrb[2].mxu1 }
 0x1d4   : > { %2410 = vtanh.f32 %v655_v37  ;;  %v658_v42 = vadd.f32 %v2297_v41, %v2196_v35  ;;  %v649_v43 = vpop.f32.mrb[3].mxu1 }
 0x1d5   : > { %2412 = vtanh.f32 %v647_v40  ;;  %v650_v44 = vadd.f32 %v2196_v35, %v649_v43 }
 0x1d6   : > { %2414 = vtanh.f32 %v658_v42 }
 0x1d7   : > { %2416 = vtanh.f32 %v650_v44 }
 0x1d9   : > { %v2300_v45 = vpop.f32.mrb[4].mxu1 }
 0x1da   : > { %v671_v46 = vadd.f32 %v2300_v45, %v2196_v35  ;;  %v662_v47 = vpop.f32.mrb[5].mxu1 }
 0x1db   : > { %v663_v38 = vadd.f32 %v2196_v35, %v662_v47  ;;  %v2301_v48 = vpop.f32.mrb[6].mxu1 }
 0x1dc   : > { %2418 = vtanh.f32 %v671_v46  ;;  %v674_v49 = vadd.f32 %v2301_v48, %v2196_v35  ;;  %v665_v50 = vpop.f32.mrb[7].mxu1 }
 0x1dd   : > { %2420 = vtanh.f32 %v663_v38  ;;  %v666_v51 = vadd.f32 %v2196_v35, %v665_v50 }
 0x1de   : > { %v2411_v52 = vpop.eup %2410  ;;  %2422 = vtanh.f32 %v674_v49 }
 0x1df   : > { %v2413_v53 = vpop.eup %2412  ;;  %2424 = vtanh.f32 %v666_v51 }
 0x1e0   : > { %v2415_v54 = vpop.eup %2414 }
 0x1e1   : > { %v2417_v55 = vpop.eup %2416  ;;  %v726_v56 = vpack.c.bf16 %v2415_v54, %v2411_v52  ;;  %v2304_v57 = vpop.f32.mrb[8].mxu1 }
 0x1e2   : > { %v725_v58 = vpack.c.bf16 %v2417_v55, %v2413_v53  ;;  %v687_v59 = vadd.f32 %v2304_v57, %v2196_v35  ;;  %v678_v60 = vpop.f32.mrb[9].mxu1 }
 0x1e3   : > { %v679_v61 = vadd.f32 %v2196_v35, %v678_v60  ;;  %v2305_v62 = vpop.f32.mrb[10].mxu1 }
 0x1e4   : > { %2326 = vmatprep.mubr.bf16.mxu0 %v725_v58  ;;  %2426 = vtanh.f32 %v687_v59  ;;  %v690_v63 = vadd.f32 %v2305_v62, %v2196_v35  ;;  %v681_v0 = vpop.f32.mrb[11].mxu1  ;;  %v2750_v62 = vmul.f32 -2.0, %v2565_v5 }
 0x1e5   : > { %2327 = vmatmul.mubr.bf16.vlgmr.msra.gmra.mrb[16].mxu0 %v726_v56  ;;  %2428 = vtanh.f32 %v679_v61  ;;  %v682_v1 = vadd.f32 %v2196_v35, %v681_v0  ;;  %v2747_v61 = vmul.f32 -2.0, %v2571_v7 }
 0x1e6   : > { %v2419_v2 = vpop.eup %2418  ;;  %2430 = vtanh.f32 %v690_v63 }
 0x1e7   : > { %v2421_v3 = vpop.eup %2420  ;;  %2432 = vtanh.f32 %v682_v1 }
 0x1e8   : > { %v2423_v4 = vpop.eup %2422 }
 0x1e9   : > { %v2425_v8 = vpop.eup %2424  ;;  %v728_v12 = vpack.c.bf16 %v2423_v4, %v2419_v2  ;;  %v2308_v13 = vpop.f32.mrb[12].mxu1  ;;  %v2760_v4 = vmul.f32 -2.0, %v2568_v6 }
 0x1ea   : > { %v727_v18 = vpack.c.bf16 %v2425_v8, %v2421_v3  ;;  %v703_v19 = vadd.f32 %v2308_v13, %v2196_v35  ;;  %v694_v24 = vpop.f32.mrb[13].mxu1  ;;  %v2757_v3 = vmul.f32 -2.0, %v2576_v9 }
 0x1eb   : > { %v695_v25 = vadd.f32 %v2196_v35, %v694_v24  ;;  %v2309_v28 = vpop.f32.mrb[14].mxu1 }
 0x1ec   : > { %2330 = vmatprep.mubr.bf16.mxu0 %v727_v18  ;;  %2434 = vtanh.f32 %v703_v19  ;;  %v706_v29 = vadd.f32 %v2309_v28, %v2196_v35  ;;  %v697_v30 = vpop.f32.mrb[15].mxu1 }
 0x1ed   : > { %2331 = vmatmul.mubr.bf16.gmra.mrb[20].mxu0 %v728_v12  ;;  %2436 = vtanh.f32 %v695_v25  ;;  %v698_v31 = vadd.f32 %v2196_v35, %v697_v30  ;;  %v2732_v35 = vld [vmem:[%s3621_s7] ss:$0 sm:$0xff] }
 0x1ee   : > { %v2427_v32 = vpop.eup %2426  ;;  %2438 = vtanh.f32 %v706_v29  ;;  %v2787_v29 = vmul.f32 -2.0, %v2591_v14  ;;  %v2801_v14 = vmul.f32 -2.0, %v2582_v11 }
 0x1ef   : > { %v2429_v33 = vpop.eup %2428  ;;  %2440 = vtanh.f32 %v698_v31  ;;  %v2791_v31 = vmul.f32 -2.0, %v2579_v10 }
 0x1f0   : > { %v2431_v34 = vpop.eup %2430 }
 0x1f1   : > { %v2433_v36 = vpop.eup %2432  ;;  %v730_v37 = vpack.c.bf16 %v2431_v34, %v2427_v32 }
 0x1f2   : > { %v729_v39 = vpack.c.bf16 %v2433_v36, %v2429_v33  ;;  %v2797_v36 = vmul.f32 -2.0, %v2594_v15 }
 0x1f4   : > { %2334 = vmatprep.mubr.bf16.mxu0 %v729_v39 }
 0x1f5   : > { %2335 = vmatmul.mubr.bf16.gmra.mrb[24].mxu0 %v730_v37 }
 0x1f6   : > { %v2435_v40 = vpop.eup %2434 }
 0x1f7   : > { %v2437_v41 = vpop.eup %2436 }
 0x1f8   : > { %v2439_v42 = vpop.eup %2438 }
 0x1f9   : > { %v2441_v43 = vpop.eup %2440  ;;  %v732_v44 = vpack.c.bf16 %v2439_v42, %v2435_v40 }
 0x1fa   : > { %v731_v45 = vpack.c.bf16 %v2441_v43, %v2437_v41  ;;  %v2816_v43 = vpop.xlane.xlu1 %924 }
 0x1fc   : > { %2338 = vmatprep.mubr.bf16.mxu0 %v731_v45 }
 0x1fd   : > { %2339 = vmatmul.mubr.bf16.gmra.mrb[28].mxu0 %v732_v44 }
 0x1fe   : > { %v2820_v44 = vpop.xlane.xlu1 %927 }
 0x202   : > { %v2822_v45 = vpop.xlane.xlu1 %933 }
 0x2b8   : > { %v2328_v46 = vpop.f32.mrb[16].mxu0 }
 0x2b9   : > { %v847_v47 = vadd.f32 %v2328_v46, %v2732_v35  ;;  %v838_v38 = vpop.f32.mrb[17].mxu0  ;;  %v2825_v46 = vmul.f32 -2.0, %v2610_v20 }
 0x2ba   : > { %v839_v48 = vadd.f32 %v2732_v35, %v838_v38  ;;  %v2329_v49 = vpop.f32.mrb[18].mxu0  ;;  %v2829_v38 = vmul.f32 -2.0, %v2597_v16 }
 0x2bb   : > { %1081 = vrot.lane.b32.xlu1 %v847_v47, %s2482_s13  ;;  %v841_v50 = vpop.f32.mrb[19].mxu0  ;;  %v850_v52 = vadd.f32 %v2329_v49, %v2732_v35  ;;  %v999_v63 = vmul.f32 %v2747_v61, %v847_v47  ;;  %v2833_v49 = vpop.xlane.xlu0 %918 }
 0x2bc   : > { %1077 = vrot.lane.b32.xlu0 %v839_v48, %s2482_s13  ;;  %v842_v57 = vadd.f32 %v2732_v35, %v841_v50  ;;  %v997_v1 = vmul.f32 %v2750_v62, %v839_v48 }
 0x2bd   : > { %v1019_v0 = vsel %vm395_vm0, %v999_v63, 0.0  ;;  %v1000_v7 = vmul.f32 %v2757_v3, %v850_v52 }
 0x2be   : > { %v1013_v2 = vsel %vm395_vm0, %v997_v1, 0.0  ;;  %v998_v8 = vmul.f32 %v2760_v4, %v842_v57 }
 0x2bf   : > { %1257 = vrot.lane.b32.xlu1 %v847_v47, %s2483_s14  ;;  %v1022_v5 = vsel %vm395_vm0, %v1000_v7, 0.0  ;;  %v2840_v20 = vpop.xlane.xlu0 %921 }
 0x2c0   : > { %1253 = vrot.lane.b32.xlu0 %v839_v48, %s2483_s14  ;;  %v2332_v51 = vpop.f32.mrb[20].mxu0  ;;  %v1016_v13 = vsel %vm395_vm0, %v998_v8, 0.0  ;;  %v2831_v48 = vpop.xlane.xlu1 %939 }
 0x2c1   : > { %v854_v53 = vpop.f32.mrb[21].mxu0  ;;  %v863_v12 = vadd.f32 %v2332_v51, %v2732_v35 }
 0x2c2   : > { %v2333_v54 = vpop.f32.mrb[22].mxu0  ;;  %v855_v6 = vadd.f32 %v2732_v35, %v854_v53 }
 0x2c3   : > { %1083 = vrot.lane.b32.xlu1 %v850_v52, %s2482_s13  ;;  %v857_v55 = vpop.f32.mrb[23].mxu0  ;;  %v866_v18 = vadd.f32 %v2333_v54, %v2732_v35  ;;  %v1003_v30 = vmul.f32 %v2787_v29, %v863_v12  ;;  %v2844_v16 = vpop.xlane.xlu0 %930 }
 0x2c4   : > { %v858_v28 = vadd.f32 %v2732_v35, %v857_v55  ;;  %v1001_v33 = vmul.f32 %v2791_v31, %v855_v6  ;;  %v2847_v55 = vmul.f32 -2.0, %v2613_v21 }
 0x2c5   : > { %v1031_v32 = vsel %vm395_vm0, %v1003_v30, 0.0  ;;  %v1004_v37 = vmul.f32 %v2797_v36, %v866_v18 }
 0x2c6   : > { %v1025_v34 = vsel %vm395_vm0, %v1001_v33, 0.0  ;;  %v1002_v10 = vmul.f32 %v2801_v14, %v858_v28 }
 0x2c7   : > { %1259 = vrot.lane.b32.xlu1 %v850_v52, %s2483_s14  ;;  %v1034_v39 = vsel %vm395_vm0, %v1004_v37, 0.0  ;;  %v2837_v52 = vpop.xlane.xlu1 %945 }
 0x2c8   : > { %v2336_v56 = vpop.f32.mrb[24].mxu0  ;;  %v1028_v41 = vsel %vm395_vm0, %v1002_v10, 0.0  ;;  %3656 = vst [vmem:[#allocation2_spill] sm:$0xff] %v2837_v52 }
 0x2c9   : > { %v870_v58 = vpop.f32.mrb[25].mxu0  ;;  %v879_v40 = vadd.f32 %v2336_v56, %v2732_v35 }
 0x2ca   : > { %v2337_v59 = vpop.f32.mrb[26].mxu0  ;;  %v871_v15 = vadd.f32 %v2732_v35, %v870_v58  ;;  %v2853_v58 = vmul.f32 -2.0, %v2601_v17 }
 0x2cb   : > { %1079 = vrot.lane.b32.xlu1 %v842_v57, %s2482_s13  ;;  %v873_v60 = vpop.f32.mrb[27].mxu0  ;;  %v882_v11 = vadd.f32 %v2337_v59, %v2732_v35  ;;  %v1007_v47 = vmul.f32 %v2825_v46, %v879_v40  ;;  %v2842_v54 = vpop.xlane.xlu1 %951 }
 0x2cc   : > { %v874_v42 = vadd.f32 %v2732_v35, %v873_v60  ;;  %v1005_v51 = vmul.f32 %v2829_v38, %v871_v15  ;;  %3657 = vst [vmem:[#allocation3_spill] sm:$0xff] %v2842_v54  ;;  %v2855_v59 = vpop.xlane.xlu0 %936 }
 0x2cd   : > { %v1043_v50 = vsel %vm395_vm0, %v1007_v47, 0.0 }
 0x2ce   : > { %v1037_v53 = vsel %vm395_vm0, %v1005_v51, 0.0  ;;  %v1006_v63 = vmul.f32 %v2853_v58, %v874_v42 }
 0x2cf   : > { %1255 = vrot.lane.b32.xlu1 %v842_v57, %s2483_s14  ;;  %v2849_v56 = vpop.xlane.xlu1 %957  ;;  %v1008_v57 = vmul.f32 %v2847_v55, %v882_v11 }
 0x2d0   : > { %v2769_v9 = vpop.f32.mrb[28].mxu0  ;;  %3658 = vst [vmem:[#allocation4_spill] sm:$0xff] %v2849_v56  ;;  %v2863_v1 = vpop.xlane.xlu0 %942 }
 0x2d1   : > { %v2775_v19 = vpop.f32.mrb[29].mxu0  ;;  %v1046_v60 = vsel %vm395_vm0, %v1008_v57, 0.0  ;;  %v895_v21 = vadd.f32 %v2769_v9, %v2732_v35  ;;  %3660 = vst [vmem:[#allocation6_spill] sm:$0xff] %v2863_v1 }
 0x2d2   : > { %v2778_v24 = vpop.f32.mrb[30].mxu0 }
 0x2d3   : > { %v2780_v25 = vpop.f32.mrb[31].mxu0  ;;  %v898_v9 = vadd.f32 %v2778_v24, %v2732_v35  ;;  %v2889_v24 = vmul.f32 -2.0, %v2628_v26 }
 0x2d4   : > { %v2867_v7 = vpop.xlane.xlu0 %948 }
 0x2d5   : > { %3661 = vst [vmem:[#allocation7_spill] sm:$0xff] %v2867_v7  ;;  %v1011_v10 = vmul.f32 %v2889_v24, %v895_v21 }
 0x2df   : > { %1020 = vadd.xlane.f32.xlu0 %v1019_v0  ;;  %v2859_v0 = vpop.xlane.xlu1 %963 }
 0x2e0   : > { %3659 = vst [vmem:[#allocation5_spill] sm:$0xff] %v2859_v0 }
 0x2e3   : > { %1014 = vadd.xlane.f32.xlu0 %v1013_v2  ;;  %v1040_v2 = vsel %vm395_vm0, %v1006_v63, 0.0 }
 0x2f3   : > { %1023 = vadd.xlane.f32.xlu1 %v1022_v5  ;;  %v887_v5 = vadd.f32 %v2732_v35, %v2775_v19  ;;  %v890_v19 = vadd.f32 %v2732_v35, %v2780_v25  ;;  %v2897_v35 = vmul.f32 -2.0, %v2616_v22 }
 0x2f7   : > { %1017 = vadd.xlane.f32.xlu1 %v1016_v13 }
 0x2f9   : > { %1089 = vrot.lane.b32.xlu0 %v863_v12, %s2482_s13 }
 0x2fd   : > { %1265 = vrot.lane.b32.xlu0 %v863_v12, %s2483_s14  ;;  %v2873_v12 = vpop.xlane.xlu0 %954 }
 0x2fe   : > { %3662 = vst [vmem:[#allocation8_spill] sm:$0xff] %v2873_v12 }
 0x301   : > { %1085 = vrot.lane.b32.xlu0 %v855_v6, %s2482_s13 }
 0x305   : > { %1261 = vrot.lane.b32.xlu0 %v855_v6, %s2483_s14  ;;  %v2878_v6 = vpop.xlane.xlu0 %960 }
 0x306   : > { %3663 = vst [vmem:[#allocation9_spill] sm:$0xff] %v2878_v6 }
 0x308   : > { %1091 = vrot.lane.b32.xlu1 %v866_v18, %s2482_s13 }
 0x30c   : > { %1267 = vrot.lane.b32.xlu1 %v866_v18, %s2483_s14 }
 0x310   : > { %1087 = vrot.lane.b32.xlu1 %v858_v28, %s2482_s13 }
 0x314   : > { %1263 = vrot.lane.b32.xlu1 %v858_v28, %s2483_s14 }
 0x324   : > { %1032 = vadd.xlane.f32.xlu0 %v1031_v32 }
 0x328   : > { %1026 = vadd.xlane.f32.xlu0 %v1025_v34 }
 0x32d   : > { %v1082_v17 = vpop.permute.xlu1 %1081 }
 0x32e   : > { %v1078_v28 = vpop.permute.xlu0 %1077  ;;  %v1127_v26 = vmul.f32 %v1082_v17, %v2747_v61 }
 0x330   : > { %v1147_v22 = vsel %vm395_vm0, %v1127_v26, 0.0 }
 0x331   : > { %v1258_v8 = vpop.permute.xlu1 %1257 }
 0x332   : > { %v1254_v32 = vpop.permute.xlu0 %1253 }
 0x335   : > { %v1084_v13 = vpop.permute.xlu1 %1083 }
 0x338   : > { %1035 = vadd.xlane.f32.xlu1 %v1034_v39 }
 0x339   : > { %v1260_v18 = vpop.permute.xlu1 %1259 }
 0x33c   : > { %1029 = vadd.xlane.f32.xlu1 %v1028_v41  ;;  %v1009_v41 = vmul.f32 %v2897_v35, %v887_v5 }
 0x33d   : > { %v1080_v30 = vpop.permute.xlu1 %1079 }
 0x33e   : > { %1097 = vrot.lane.b32.xlu0 %v879_v40, %s2482_s13 }
 0x341   : > { %v1256_v33 = vpop.permute.xlu1 %1255 }
 0x342   : > { %1273 = vrot.lane.b32.xlu0 %v879_v40, %s2483_s14  ;;  %v1055_v40 = vsel %vm395_vm0, %v1011_v10, 0.0 }
 0x346   : > { %1093 = vrot.lane.b32.xlu0 %v871_v15, %s2482_s13 }
 0x34a   : > { %1269 = vrot.lane.b32.xlu0 %v871_v15, %s2483_s14 }
 0x34d   : > { %1099 = vrot.lane.b32.xlu1 %v882_v11, %s2482_s13 }
 0x351   : > { %1275 = vrot.lane.b32.xlu1 %v882_v11, %s2483_s14  ;;  %v1049_v11 = vsel %vm395_vm0, %v1009_v41, 0.0 }
 0x355   : > { %1095 = vrot.lane.b32.xlu1 %v874_v42, %s2482_s13 }
 0x359   : > { %1271 = vrot.lane.b32.xlu1 %v874_v42, %s2483_s14 }
 0x369   : > { %1044 = vadd.xlane.f32.xlu0 %v1043_v50  ;;  %v1303_v50 = vmul.f32 %v1258_v8, %v2747_v61  ;;  %v2916_v61 = vmul.f32 -2.0, %v2619_v23  ;;  %v1126_v23 = vmul.f32 %v1080_v30, %v2760_v4 }
 0x36b   : > { %v1323_v57 = vsel %vm395_vm0, %v1303_v50, 0.0  ;;  %v1144_v50 = vsel %vm395_vm0, %v1126_v23, 0.0 }
 0x36c   : > { %v2886_v34 = vpop.xlane.xlu0 %1020 }
 0x36d   : > { %1038 = vadd.xlane.f32.xlu0 %v1037_v53  ;;  %v1125_v53 = vmul.f32 %v1078_v28, %v2750_v62  ;;  %v1128_v28 = vmul.f32 %v1084_v13, %v2757_v3 }
 0x36f   : > { %v1150_v26 = vsel %vm395_vm0, %v1128_v28, 0.0 }
 0x370   : > { %v2893_v39 = vpop.xlane.xlu0 %1014 }
 0x374   : > { %v1090_v15 = vpop.permute.xlu0 %1089 }
 0x378   : > { %v1266_v47 = vpop.permute.xlu0 %1265 }
 0x37c   : > { %v1086_v63 = vpop.permute.xlu0 %1085 }
 0x37d   : > { %1047 = vadd.xlane.f32.xlu1 %v1046_v60  ;;  %v2910_v60 = vmul.f32 -2.0, %v2631_v27 }
 0x37f   : > { %v1012_v17 = vmul.f32 %v2910_v60, %v898_v9 }
 0x380   : > { %v2891_v37 = vpop.xlane.xlu1 %1023  ;;  %v1262_v8 = vpop.permute.xlu0 %1261 }
 0x381   : > { %1041 = vadd.xlane.f32.xlu1 %v1040_v2  ;;  %v1141_v2 = vsel %vm395_vm0, %v1125_v53, 0.0  ;;  %v1058_v10 = vsel %vm395_vm0, %v1012_v17, 0.0 }
 0x383   : > { %1105 = vrot.lane.b32.xlu0 %v895_v21, %s2482_s13 }
 0x384   : > { %v2899_v25 = vpop.xlane.xlu1 %1017 }
 0x387   : > { %1281 = vrot.lane.b32.xlu0 %v895_v21, %s2483_s14  ;;  %v1301_v21 = vmul.f32 %v1254_v32, %v2750_v62 }
 0x388   : > { %v1092_v42 = vpop.permute.xlu1 %1091 }
 0x389   : > { %v1317_v27 = vsel %vm395_vm0, %v1301_v21, 0.0 }
 0x38b   : > { %1101 = vrot.lane.b32.xlu0 %v887_v5, %s2482_s13 }
 0x38c   : > { %v1268_v51 = vpop.permute.xlu1 %1267 }
 0x38f   : > { %1277 = vrot.lane.b32.xlu0 %v887_v5, %s2483_s14 }
 0x390   : > { %v1088_v5 = vpop.permute.xlu1 %1087 }
 0x392   : > { %1107 = vrot.lane.b32.xlu1 %v898_v9, %s2482_s13 }
 0x394   : > { %v1264_v62 = vpop.permute.xlu1 %1263 }
 0x396   : > { %1283 = vrot.lane.b32.xlu1 %v898_v9, %s2483_s14  ;;  %v1304_v9 = vmul.f32 %v1260_v18, %v2757_v3  ;;  %v1307_v3 = vmul.f32 %v1266_v47, %v2787_v29  ;;  %v1132_v18 = vmul.f32 %v1092_v42, %v2797_v36  ;;  %v1305_v42 = vmul.f32 %v1262_v8, %v2791_v31 }
 0x397   : > { %v1130_v47 = vmul.f32 %v1088_v5, %v2801_v14 }
 0x398   : > { %v1335_v17 = vsel %vm395_vm0, %v1307_v3, 0.0 }
 0x39a   : > { %1103 = vrot.lane.b32.xlu1 %v890_v19, %s2482_s13 }
 0x39e   : > { %1279 = vrot.lane.b32.xlu1 %v890_v19, %s2483_s14 }
 0x3ae   : > { %1056 = vadd.xlane.f32.xlu0 %v1055_v40  ;;  %v1010_v40 = vmul.f32 %v2916_v61, %v890_v19  ;;  %v1131_v19 = vmul.f32 %v1090_v15, %v2787_v29  ;;  %v1308_v15 = vmul.f32 %v1268_v51, %v2797_v36  ;;  %v1306_v36 = vmul.f32 %v1264_v62, %v2801_v14 }
 0x3b0   : > { %v1052_v41 = vsel %vm395_vm0, %v1010_v40, 0.0  ;;  %v1338_v28 = vsel %vm395_vm0, %v1308_v15, 0.0  ;;  %v1329_v40 = vsel %vm395_vm0, %v1305_v42, 0.0  ;;  %v1332_v23 = vsel %vm395_vm0, %v1306_v36, 0.0 }
 0x3b1   : > { %v2922_v32 = vpop.xlane.xlu0 %1032 }
 0x3b2   : > { %1050 = vadd.xlane.f32.xlu0 %v1049_v11  ;;  %v1302_v11 = vmul.f32 %v1256_v33, %v2760_v4  ;;  %v1129_v33 = vmul.f32 %v1086_v63, %v2791_v31  ;;  %v1156_v63 = vsel %vm395_vm0, %v1130_v47, 0.0 }
 0x3b4   : > { %v1320_v30 = vsel %vm395_vm0, %v1302_v11, 0.0 }
 0x3b5   : > { %v2934_v53 = vpop.xlane.xlu0 %1026 }
 0x3b6   : > { %1148 = vadd.xlane.f32.xlu0 %v1147_v22  ;;  %v1326_v22 = vsel %vm395_vm0, %v1304_v9, 0.0 }
 0x3b9   : > { %v1098_v4 = vpop.permute.xlu0 %1097 }
 0x3ba   : > { %1324 = vadd.xlane.f32.xlu0 %v1323_v57  ;;  %v1159_v57 = vsel %vm395_vm0, %v1131_v19, 0.0  ;;  %v1135_v51 = vmul.f32 %v1098_v4, %v2825_v46 }
 0x3be   : > { %1142 = vadd.xlane.f32.xlu0 %v1141_v2  ;;  %v1162_v2 = vsel %vm395_vm0, %v1132_v18, 0.0 }
 0x3c2   : > { %1059 = vadd.xlane.f32.xlu1 %v1058_v10  ;;  %1318 = vadd.xlane.f32.xlu0 %v1317_v27  ;;  %v1153_v10 = vsel %vm395_vm0, %v1129_v33, 0.0  ;;  %v1274_v27 = vpop.permute.xlu0 %1273 }
 0x3c3   : > { %v1311_v5 = vmul.f32 %v1274_v27, %v2825_v46 }
 0x3c5   : > { %v2928_v13 = vpop.xlane.xlu1 %1035  ;;  %v1347_v19 = vsel %vm395_vm0, %v1311_v5, 0.0 }
 0x3c6   : > { %1053 = vadd.xlane.f32.xlu1 %v1052_v41  ;;  %1151 = vadd.xlane.f32.xlu0 %v1150_v26  ;;  %v1094_v31 = vpop.permute.xlu0 %1093  ;;  %v1171_v41 = vsel %vm395_vm0, %v1135_v51, 0.0 }
 0x3c7   : > { %v1133_v62 = vmul.f32 %v1094_v31, %v2829_v38 }
 0x3c9   : > { %v2940_v21 = vpop.xlane.xlu1 %1029  ;;  %v1165_v18 = vsel %vm395_vm0, %v1133_v62, 0.0 }
 0x3ca   : > { %1145 = vadd.xlane.f32.xlu1 %v1144_v50  ;;  %1327 = vadd.xlane.f32.xlu0 %v1326_v22  ;;  %v1270_v50 = vpop.permute.xlu0 %1269 }
 0x3cb   : > { %v1309_v46 = vmul.f32 %v1270_v50, %v2829_v38 }
 0x3cd   : > { %v1100_v29 = vpop.permute.xlu1 %1099  ;;  %v1341_v4 = vsel %vm395_vm0, %v1309_v46, 0.0 }
 0x3ce   : > { %1321 = vadd.xlane.f32.xlu1 %v1320_v30  ;;  %1160 = vadd.xlane.f32.xlu0 %v1159_v57  ;;  %v1136_v8 = vmul.f32 %v1100_v29, %v2847_v55 }
 0x3d0   : > { %v1174_v11 = vsel %vm395_vm0, %v1136_v8, 0.0 }
 0x3d1   : > { %v1276_v9 = vpop.permute.xlu1 %1275 }
 0x3d2   : > { %1163 = vadd.xlane.f32.xlu1 %v1162_v2  ;;  %1336 = vadd.xlane.f32.xlu0 %v1335_v17  ;;  %v1312_v26 = vmul.f32 %v1276_v9, %v2847_v55 }
 0x3d4   : > { %v1350_v3 = vsel %vm395_vm0, %v1312_v26, 0.0 }
 0x3d5   : > { %v1096_v14 = vpop.permute.xlu1 %1095 }
 0x3d6   : > { %1339 = vadd.xlane.f32.xlu1 %v1338_v28  ;;  %1154 = vadd.xlane.f32.xlu0 %v1153_v10  ;;  %v1134_v22 = vmul.f32 %v1096_v14, %v2853_v58 }
 0x3d8   : > { %v1168_v57 = vsel %vm395_vm0, %v1134_v22, 0.0 }
 0x3d9   : > { %v1272_v30 = vpop.permute.xlu1 %1271 }
 0x3da   : > { %1157 = vadd.xlane.f32.xlu1 %v1156_v63  ;;  %1330 = vadd.xlane.f32.xlu0 %v1329_v40  ;;  %v1310_v55 = vmul.f32 %v1272_v30, %v2853_v58 }
 0x3dc   : > { %v1344_v33 = vsel %vm395_vm0, %v1310_v55, 0.0 }
 0x3de   : > { %1333 = vadd.xlane.f32.xlu1 %v1332_v23  ;;  %1172 = vadd.xlane.f32.xlu0 %v1171_v41 }
 0x3e2   : > { %1175 = vadd.xlane.f32.xlu1 %v1174_v11  ;;  %1348 = vadd.xlane.f32.xlu0 %v1347_v19 }
 0x3e6   : > { %1351 = vadd.xlane.f32.xlu1 %v1350_v3  ;;  %1166 = vadd.xlane.f32.xlu0 %v1165_v18 }
 0x3ea   : > { %1169 = vadd.xlane.f32.xlu1 %v1168_v57  ;;  %1342 = vadd.xlane.f32.xlu0 %v1341_v4  ;;  %v3021_v57 = vld [vmem:[%s3004_s18] sm:$0xff] }
 0x3ee   : > { %1345 = vadd.xlane.f32.xlu1 %v1344_v33 }
 0x3f6   : > { %v2970_v38 = vpop.xlane.xlu0 %1044 }
 0x3fa   : > { %v2972_v15 = vpop.xlane.xlu0 %1038 }
 0x3fb   : > { %3664 = vst [vmem:[#allocation10_spill] sm:$0xff] %v2972_v15 }
 0x3fe   : > { %v1106_v2 = vpop.permute.xlu0 %1105 }
 0x3ff   : > { %v1139_v17 = vmul.f32 %v1106_v2, %v2889_v24 }
 0x401   : > { %v1183_v29 = vsel %vm395_vm0, %v1139_v17, 0.0 }
 0x402   : > { %v1282_v42 = vpop.permute.xlu0 %1281  ;;  %1184 = vadd.xlane.f32.xlu0 %v1183_v29  ;;  %v3033_v29 = vld [vmem:[%s3004_s18 + $0x18] sm:$0xff] }
 0x403   : > { %v1315_v51 = vmul.f32 %v1282_v42, %v2889_v24 }
 0x405   : > { %v1359_v9 = vsel %vm395_vm0, %v1315_v51, 0.0 }
 0x406   : > { %v1102_v58 = vpop.permute.xlu0 %1101 }
 0x407   : > { %v1137_v47 = vmul.f32 %v1102_v58, %v2897_v35  ;;  %v2485_v58 = vmov 0  }
 0x408   : > { %2356 = vset.pattern.permute.xlu1 %v2485_v58  ;;  %2357 = vset.pattern.permute.xlu0 %v2485_v58 }
 0x409   : > { %v1177_v28 = vsel %vm395_vm0, %v1137_v47, 0.0 }
 0x40a   : > { %v2978_v10 = vpop.xlane.xlu1 %1047  ;;  %1178 = vadd.xlane.f32.xlu0 %v1177_v28  ;;  %v1278_v27 = vpop.permute.xlu0 %1277  ;;  %v3041_v28 = vld [vmem:[%s3004_s18 + $0x8] sm:$0xff] }
 0x40b   : > { %3665 = vst [vmem:[#allocation11_spill] sm:$0xff] %v2978_v10  ;;  %v1313_v36 = vmul.f32 %v1278_v27, %v2897_v35  ;;  %v3143_v10 = vld [vmem:[%s3004_s18 + $0x60] sm:$0xff] }
 0x40c   : > { %3684 = vst [vmem:[#allocation30_spill] sm:$0xff] %v3143_v10 }
 0x40d   : > { %v1353_v63 = vsel %vm395_vm0, %v1313_v36, 0.0 }
 0x40e   : > { %v2983_v40 = vpop.xlane.xlu1 %1041  ;;  %1354 = vadd.xlane.f32.xlu0 %v1353_v63 }
 0x40f   : > { %3666 = vst [vmem:[#allocation12_spill] sm:$0xff] %v2983_v40  ;;  %v3135_v40 = vld [vmem:[%s3004_s18 + $0x70] sm:$0xff] }
 0x410   : > { %3682 = vst [vmem:[#allocation28_spill] sm:$0xff] %v3135_v40 }
 0x412   : > { %v1108_v31 = vpop.permute.xlu1 %1107  ;;  %1360 = vadd.xlane.f32.xlu0 %v1359_v9  ;;  %v3053_v9 = vld [vmem:[%s3004_s18 + $0x30] sm:$0xff] }
 0x413   : > { %v1140_v5 = vmul.f32 %v1108_v31, %v2910_v60 }
 0x415   : > { %v1186_v8 = vsel %vm395_vm0, %v1140_v5, 0.0 }
 0x416   : > { %1187 = vadd.xlane.f32.xlu1 %v1186_v8  ;;  %v1284_v23 = vpop.permute.xlu1 %1283  ;;  %v3061_v8 = vld [vmem:[%s3004_s18 + $0x38] sm:$0xff] }
 0x417   : > { %v1316_v26 = vmul.f32 %v1284_v23, %v2910_v60 }
 0x419   : > { %v1362_v19 = vsel %vm395_vm0, %v1316_v26, 0.0 }
 0x41a   : > { %v1104_v41 = vpop.permute.xlu1 %1103 }
 0x41b   : > { %v1138_v35 = vmul.f32 %v1104_v41, %v2916_v61 }
 0x41d   : > { %v1180_v24 = vsel %vm395_vm0, %v1138_v35, 0.0 }
 0x41e   : > { %1181 = vadd.xlane.f32.xlu1 %v1180_v24  ;;  %v1280_v14 = vpop.permute.xlu1 %1279 }
 0x41f   : > { %v1314_v62 = vmul.f32 %v1280_v14, %v2916_v61  ;;  %v3009_v61 = vld [vmem:[%s3004_s18 + $0x10] sm:$0xff]  ;;  %v3073_v14 = vld [vmem:[%s3004_s18 + $0x20] sm:$0xff] }
 0x421   : > { %v1356_v11 = vsel %vm395_vm0, %v1314_v62, 0.0 }
 0x422   : > { %1357 = vadd.xlane.f32.xlu1 %v1356_v11  ;;  %v3081_v11 = vld [vmem:[%s3004_s18 + $0x28] sm:$0xff] }
 0x426   : > { %1363 = vadd.xlane.f32.xlu1 %v1362_v19 }
 0x43b   : > { %v2994_v50 = vpop.xlane.xlu0 %1056 }
 0x43c   : > { %3667 = vst [vmem:[#allocation13_spill] sm:$0xff] %v2994_v50 }
 0x43f   : > { %v2996_v46 = vpop.xlane.xlu0 %1050 }
 0x440   : > { %3668 = vst [vmem:[#allocation14_spill] sm:$0xff] %v2996_v46  ;;  %v3121_v46 = vld [vmem:[%s3004_s18 + $0x48] sm:$0xff] }
 0x441   : > { %3677 = vst [vmem:[#allocation23_spill] sm:$0xff] %v3121_v46 }
 0x443   : > { %v2998_v22 = vpop.xlane.xlu0 %1148 }
 0x447   : > { %v3006_v60 = vpop.xlane.xlu0 %1324 }
 0x448   : > { %v1367_v3 = vmul.f32 %v3006_v60, %v3009_v61 }
 0x44a   : > { %1401 = vrot.lane.b32.xlu1 %v1367_v3, %s2484_s19 }
 0x44b   : > { %v3014_v18 = vpop.xlane.xlu0 %1142 }
 0x44c   : > { %v1221_v15 = vmul.f32 %v3014_v18, %v3014_v18 }
 0x44f   : > { %v3016_v30 = vpop.xlane.xlu1 %1059  ;;  %v3018_v55 = vpop.xlane.xlu0 %1318 }
 0x450   : > { %3669 = vst [vmem:[#allocation15_spill] sm:$0xff] %v3016_v30  ;;  %v1365_v4 = vmul.f32 %v3018_v55, %v3021_v57  ;;  %v3113_v30 = vld [vmem:[%s3004_s18 + $0x40] sm:$0xff] }
 0x451   : > { %3676 = vst [vmem:[#allocation22_spill] sm:$0xff] %v3113_v30 }
 0x452   : > { %1397 = vrot.lane.b32.xlu0 %v1365_v4, %s2484_s19 }
 0x453   : > { %v3026_v33 = vpop.xlane.xlu1 %1053  ;;  %v3028_v2 = vpop.xlane.xlu0 %1151 }
 0x454   : > { %3670 = vst [vmem:[#allocation16_spill] sm:$0xff] %v3026_v33 }
 0x457   : > { %v3030_v17 = vpop.xlane.xlu1 %1145  ;;  %v3035_v42 = vpop.xlane.xlu0 %1327 }
 0x458   : > { %v1368_v47 = vmul.f32 %v3035_v42, %v3033_v29 }
 0x45a   : > { %1403 = vrot.lane.b32.xlu1 %v1368_v47, %s2484_s19  ;;  %v3093_v47 = vld [vmem:[%s3004_s18 + $0x50] sm:$0xff] }
 0x45b   : > { %v3043_v27 = vpop.xlane.xlu1 %1321  ;;  %v3045_v36 = vpop.xlane.xlu0 %1160 }
 0x45c   : > { %v1366_v51 = vmul.f32 %v3043_v27, %v3041_v28 }
 0x45e   : > { %1399 = vrot.lane.b32.xlu1 %v1366_v51, %s2484_s19 }
 0x45f   : > { %v3050_v63 = vpop.xlane.xlu1 %1163  ;;  %v3055_v31 = vpop.xlane.xlu0 %1336 }
 0x460   : > { %v1371_v5 = vmul.f32 %v3055_v31, %v3053_v9 }
 0x462   : > { %1409 = vrot.lane.b32.xlu0 %v1371_v5, %s2484_s19 }
 0x463   : > { %v3063_v23 = vpop.xlane.xlu1 %1339  ;;  %v3065_v41 = vpop.xlane.xlu0 %1154 }
 0x464   : > { %3671 = vst [vmem:[#allocation17_spill] sm:$0xff] %v3063_v23  ;;  %v1372_v35 = vmul.f32 %v3063_v23, %v3061_v8 }
 0x466   : > { %1411 = vrot.lane.b32.xlu1 %v1372_v35, %s2484_s19  ;;  %v3101_v35 = vld [vmem:[%s3004_s18 + $0x58] sm:$0xff] }
 0x467   : > { %v3070_v24 = vpop.xlane.xlu1 %1157  ;;  %v3075_v62 = vpop.xlane.xlu0 %1330  ;;  %3673 = vst [vmem:[#allocation19_spill] sm:$0xff] %v3101_v35 }
 0x468   : > { %v1369_v26 = vmul.f32 %v3075_v62, %v3073_v14 }
 0x46a   : > { %1405 = vrot.lane.b32.xlu0 %v1369_v26, %s2484_s19 }
 0x46b   : > { %v3083_v19 = vpop.xlane.xlu1 %1333  ;;  %v3085_v3 = vpop.xlane.xlu0 %1172 }
 0x46c   : > { %v1370_v4 = vmul.f32 %v3083_v19, %v3081_v11 }
 0x46e   : > { %1407 = vrot.lane.b32.xlu1 %v1370_v4, %s2484_s19 }
 0x46f   : > { %v3090_v58 = vpop.xlane.xlu1 %1175  ;;  %v3095_v51 = vpop.xlane.xlu0 %1348 }
 0x470   : > { %3672 = vst [vmem:[#allocation18_spill] sm:$0xff] %v3090_v58  ;;  %v1375_v5 = vmul.f32 %v3095_v51, %v3093_v47 }
 0x472   : > { %1417 = vrot.lane.b32.xlu0 %v1375_v5, %s2484_s19 }
 0x473   : > { %v3103_v26 = vpop.xlane.xlu1 %1351  ;;  %v3105_v33 = vpop.xlane.xlu0 %1166 }
 0x474   : > { %3674 = vst [vmem:[#allocation20_spill] sm:$0xff] %v3103_v26  ;;  %v1376_v4 = vmul.f32 %v3103_v26, %v3101_v35 }
 0x476   : > { %1419 = vrot.lane.b32.xlu1 %v1376_v4, %s2484_s19 }
 0x477   : > { %v3110_v56 = vpop.xlane.xlu1 %1169  ;;  %v3115_v0 = vpop.xlane.xlu0 %1342 }
 0x478   : > { %3675 = vst [vmem:[#allocation21_spill] sm:$0xff] %v3110_v56  ;;  %v1373_v5 = vmul.f32 %v3115_v0, %v3113_v30  ;;  %v1463_v56 = vmul.f32 %v3006_v60, %v3006_v60 }
 0x47a   : > { %1413 = vrot.lane.b32.xlu0 %v1373_v5, %s2484_s19 }
 0x47b   : > { %v3123_v12 = vpop.xlane.xlu1 %1345 }
 0x47c   : > { %3678 = vst [vmem:[#allocation24_spill] sm:$0xff] %v3123_v12  ;;  %v1374_v50 = vmul.f32 %v3123_v12, %v3121_v46 }
 0x47e   : > { %1415 = vrot.lane.b32.xlu1 %v1374_v50, %s2484_s19 }
 0x48f   : > { %v3128_v4 = vpop.xlane.xlu0 %1184 }
 0x490   : > { %3679 = vst [vmem:[#allocation25_spill] sm:$0xff] %v3128_v4 }
 0x497   : > { %v3130_v6 = vpop.xlane.xlu0 %1178 }
 0x498   : > { %3680 = vst [vmem:[#allocation26_spill] sm:$0xff] %v3130_v6 }
 0x49b   : > { %v3132_v52 = vpop.xlane.xlu0 %1354 }
 0x49c   : > { %3681 = vst [vmem:[#allocation27_spill] sm:$0xff] %v3132_v52  ;;  %v1377_v50 = vmul.f32 %v3132_v52, %v3143_v10  ;;  %v1461_v10 = vmul.f32 %v3018_v55, %v3018_v55 }
 0x49f   : > { %v3137_v54 = vpop.xlane.xlu0 %1360 }
 0x4a0   : > { %3683 = vst [vmem:[#allocation29_spill] sm:$0xff] %v3137_v54  ;;  %v1379_v5 = vmul.f32 %v3137_v54, %v3135_v40  ;;  %v1223_v40 = vmul.f32 %v2998_v22, %v2998_v22 }
 0x4a2   : > { %1425 = vrot.lane.b32.xlu0 %v1379_v5, %s2484_s19  ;;  %v3159_v5 = vld [vmem:[%s3004_s18 + $0x78] sm:$0xff]  ;;  %v3163_v12 = vadd.f32 %v1463_v56, %v1223_v40  ;;  %v1191_v56 = vmul.f32 %v2998_v22, %v3009_v61  ;;  %v3181_v40 = vadd.f32 %v1461_v10, %v1221_v15  ;;  %v1189_v15 = vmul.f32 %v3014_v18, %v3021_v57 }
 0x4a3   : > { %v3148_v6 = vpop.xlane.xlu1 %1187  ;;  %3688 = vst [vmem:[#allocation34_spill] sm:$0xff] %v3159_v5 }
 0x4a4   : > { %3685 = vst [vmem:[#allocation31_spill] sm:$0xff] %v3148_v6  ;;  %v3169_v6 = vld [vmem:[%s3004_s18 + $0x68] sm:$0xff]  ;;  %v1557_v58 = vmax.f32 %v3181_v40, 1e-12 }
 0x4a5   : > { %3690 = vst [vmem:[#allocation36_spill] sm:$0xff] %v3169_v6 }
 0x4a6   : > { %1421 = vrot.lane.b32.xlu0 %v1377_v50, %s2484_s19 }
 0x4ab   : > { %v3150_v4 = vpop.xlane.xlu1 %1181 }
 0x4ac   : > { %3686 = vst [vmem:[#allocation32_spill] sm:$0xff] %v3150_v4  ;;  %v1559_v4 = vmax.f32 %v3163_v12, 1e-12 }
 0x4ae   : > { %2442 = vrcp.f32 %v1559_v4 }
 0x4af   : > { %v3152_v46 = vpop.xlane.xlu1 %1357  ;;  %2444 = vrcp.f32 %v1557_v58 }
 0x4b0   : > { %3687 = vst [vmem:[#allocation33_spill] sm:$0xff] %v3152_v46  ;;  %v1378_v52 = vmul.f32 %v3152_v46, %v3169_v6  ;;  %v1464_v6 = vmul.f32 %v3035_v42, %v3035_v42 }
 0x4b3   : > { %v3161_v54 = vpop.xlane.xlu1 %1363 }
 0x4b4   : > { %3689 = vst [vmem:[#allocation35_spill] sm:$0xff] %v3161_v54  ;;  %v1380_v50 = vmul.f32 %v3161_v54, %v3159_v5  ;;  %v967_v54 = vsub.f32 1.0, %v2816_v43  ;;  %v1462_v43 = vmul.f32 %v3043_v27, %v3043_v27 }
 0x4b6   : > { %1427 = vrot.lane.b32.xlu1 %v1380_v50, %s2484_s19 }
 0x4ba   : > { %1423 = vrot.lane.b32.xlu1 %v1378_v52, %s2484_s19  ;;  %v1224_v52 = vmul.f32 %v3028_v2, %v3028_v2 }
 0x4bc   : > { %v1402_v50 = vpop.permute.xlu1 %1401  ;;  %v3192_v10 = vadd.f32 %v1464_v6, %v1224_v52 }
 0x4bd   : > { %v1447_v5 = vadd.f32 %v1402_v50, %v1191_v56  ;;  %v2443_v56 = vpop.eup %2442 }
 0x4be   : > { %v1560_v26 = vmax.f32 %v3192_v10, 1e-12 }
 0x4bf   : > { %v1495_v1 = vadd.f32 %v1447_v5, %v2886_v34 }
 0x4c0   : > { %2446 = vrcp.f32 %v1560_v26  ;;  %v1465_v26 = vmul.f32 %v3075_v62, %v3075_v62 }
 0x4c1   : > { %v1511_v46 = vadd.f32 %v1495_v1, %v967_v54  ;;  %v1222_v54 = vmul.f32 %v3030_v17, %v3030_v17  ;;  %v965_v1 = vsub.f32 1.0, %v2833_v49  ;;  %v1192_v49 = vmul.f32 %v3028_v2, %v3033_v29 }
 0x4c3   : > { %v1527_v35 = vsub.f32 0.0, %v1511_v46  ;;  %v3201_v58 = vadd.f32 %v1462_v43, %v1222_v54  ;;  %v1227_v43 = vmul.f32 %v3045_v36, %v3045_v36  ;;  %v968_v54 = vsub.f32 1.0, %v2820_v44 }
 0x4c4   : > { %v1398_v34 = vpop.permute.xlu0 %1397 }
 0x4c5   : > { %v1543_v4 = vmax.f32 %v1527_v35, 0.0  ;;  %v1445_v5 = vadd.f32 %v1398_v34, %v1189_v15  ;;  %v1467_v35 = vmul.f32 %v3055_v31, %v3055_v31 }
 0x4c7   : > { %v1578_v50 = vmul.f32 %v2443_v56, %v1543_v4  ;;  %v1493_v46 = vadd.f32 %v1445_v5, %v2893_v39  ;;  %v1558_v39 = vmax.f32 %v3201_v58, 1e-12  ;;  %v3212_v56 = vadd.f32 %v1467_v35, %v1227_v43 }
 0x4c8   : > { %v966_v35 = vsub.f32 1.0, %v2840_v20  ;;  %v1468_v43 = vmul.f32 %v3063_v23, %v3063_v23 }
 0x4c9   : > { %v1509_v6 = vadd.f32 %v1493_v46, %v965_v1  ;;  %v1883_v52 = vmul.f32 %v1578_v50, %v3006_v60  ;;  %v2445_v60 = vpop.eup %2444  ;;  %2448 = vrcp.f32 %v1558_v39  ;;  %v1563_v44 = vmax.f32 %v3212_v56, 1e-12 }
 0x4cb   : > { %v1525_v15 = vsub.f32 0.0, %v1509_v6  ;;  %1917 = vrot.lane.b32.xlu1 %v1883_v52, %s2486_s20  ;;  %v1190_v6 = vmul.f32 %v3030_v17, %v3041_v28  ;;  %2450 = vrcp.f32 %v1563_v44 }
 0x4cc   : > { %v1404_v34 = vpop.permute.xlu1 %1403 }
 0x4cd   : > { %v1541_v4 = vmax.f32 %v1525_v15, 0.0  ;;  %v1448_v5 = vadd.f32 %v1404_v34, %v1192_v49  ;;  %v1607_v49 = vmul.f32 %v1578_v50, %v1578_v50 }
 0x4cf   : > { %v1574_v1 = vmul.f32 %v2445_v60, %v1541_v4  ;;  %v1496_v46 = vadd.f32 %v1448_v5, %v2891_v37  ;;  %v1225_v37 = vmul.f32 %v3065_v41, %v3065_v41  ;;  %v1195_v4 = vmul.f32 %v3045_v36, %v3053_v9 }
 0x4d0   : > { %v1400_v52 = vpop.permute.xlu1 %1399  ;;  %v1738_v60 = vmul.f32 %v1578_v50, %v2998_v22 }
 0x4d1   : > { %v1512_v30 = vadd.f32 %v1496_v46, %v968_v54  ;;  %v1446_v7 = vadd.f32 %v1400_v52, %v1190_v6  ;;  %v1881_v15 = vmul.f32 %v1574_v1, %v3018_v55  ;;  %v1228_v55 = vmul.f32 %v3050_v63, %v3050_v63  ;;  %v2447_v52 = vpop.eup %2446 }
 0x4d2   : > { %v3233_v20 = vadd.f32 %v1465_v26, %v1225_v37 }
 0x4d3   : > { %v1528_v39 = vsub.f32 0.0, %v1512_v30  ;;  %v1494_v34 = vadd.f32 %v1446_v7, %v2899_v25  ;;  %1913 = vrot.lane.b32.xlu1 %v1881_v15, %s2486_s20  ;;  %v1623_v30 = vmul.f32 %v1607_v49, %v3163_v12  ;;  %v971_v7 = vsub.f32 1.0, %v2855_v59 }
 0x4d4   : > { %v1410_v5 = vpop.permute.xlu0 %1409  ;;  %v1196_v25 = vmul.f32 %v3050_v63, %v3061_v8  ;;  %v3240_v15 = vadd.f32 %v1468_v43, %v1228_v55  ;;  %v1561_v22 = vmax.f32 %v3233_v20, 1e-12  ;;  %v1736_v12 = vmul.f32 %v1574_v1, %v3014_v18  ;;  %v2449_v43 = vpop.eup %2448 }
 0x4d5   : > { %v1544_v54 = vmax.f32 %v1528_v39, 0.0  ;;  %v1510_v46 = vadd.f32 %v1494_v34, %v966_v35  ;;  %v1451_v6 = vadd.f32 %v1410_v5, %v1195_v4  ;;  %v1754_v35 = vadd.f32 %v1738_v60, %v3009_v61 }
 0x4d6   : > { %v1605_v49 = vmul.f32 %v1574_v1, %v1574_v1  ;;  %v1466_v4 = vmul.f32 %v3083_v19, %v3083_v19  ;;  %v1193_v18 = vmul.f32 %v3065_v41, %v3073_v14  ;;  %v1226_v1 = vmul.f32 %v3070_v24, %v3070_v24 }
 0x4d7   : > { %v1580_v23 = vmul.f32 %v2447_v52, %v1544_v54  ;;  %v1526_v26 = vsub.f32 0.0, %v1510_v46  ;;  %v1499_v37 = vadd.f32 %v1451_v6, %v2922_v32  ;;  %1652 = vperm.xlu1 %2356, %v1623_v30   ;;  %v1564_v32 = vmax.f32 %v3240_v15, 1e-12 }
 0x4d8   : > { %v1412_v50 = vpop.permute.xlu1 %1411  ;;  %2452 = vrcp.f32 %v1561_v22  ;;  %v1752_v54 = vadd.f32 %v1736_v12, %v3021_v57  ;;  %v1621_v30 = vmul.f32 %v1605_v49, %v3181_v40  ;;  %v2451_v22 = vpop.eup %2450 }
 0x4d9   : > { %v1542_v59 = vmax.f32 %v1526_v26, 0.0  ;;  %v1515_v44 = vadd.f32 %v1499_v37, %v971_v7  ;;  %v1452_v39 = vadd.f32 %v1412_v50, %v1196_v25  ;;  %v1884_v34 = vmul.f32 %v1580_v23, %v3035_v42 }
 0x4da   : > { %v972_v7 = vsub.f32 1.0, %v2831_v48  ;;  %v3259_v25 = vadd.f32 %v1466_v4, %v1226_v1  ;;  %v969_v26 = vsub.f32 1.0, %v2844_v16  ;;  %2454 = vrcp.f32 %v1564_v32 }
 0x4db   : > { %v1576_v55 = vmul.f32 %v2449_v43, %v1542_v59  ;;  %v1531_v5 = vsub.f32 0.0, %v1515_v44  ;;  %1919 = vrot.lane.b32.xlu0 %v1884_v34, %s2486_s20  ;;  %1781 = vperm.xlu1 %2356, %v1754_v35   ;;  %v1500_v42 = vadd.f32 %v1452_v39, %v2928_v13  ;;  %v1194_v13 = vmul.f32 %v3070_v24, %v3081_v11 }
 0x4dc   : > { %v1406_v60 = vpop.permute.xlu0 %1405  ;;  %v1608_v12 = vmul.f32 %v1580_v23, %v1580_v23  ;;  %v1562_v16 = vmax.f32 %v3259_v25, 1e-12  ;;  %v970_v39 = vsub.f32 1.0, %v2822_v45  ;;  %v1231_v4 = vmul.f32 %v3085_v3, %v3085_v3 }
 0x4dd   : > { %v1547_v46 = vmax.f32 %v1531_v5, 0.0  ;;  %v1449_v6 = vadd.f32 %v1406_v60, %v1193_v18  ;;  %v1606_v52 = vmul.f32 %v1576_v55, %v1576_v55  ;;  %v1516_v50 = vadd.f32 %v1500_v42, %v972_v7 }
 0x4de   : > { %v1882_v40 = vmul.f32 %v1576_v55, %v3043_v27  ;;  %v1199_v27 = vmul.f32 %v3085_v3, %v3093_v47  ;;  %v1624_v5 = vmul.f32 %v1608_v12, %v3192_v10  ;;  %v1739_v18 = vmul.f32 %v1580_v23, %v3028_v2 }
 0x4df   : > { %v1497_v37 = vadd.f32 %v1449_v6, %v2934_v53  ;;  %1771 = vperm.xlu1 %2356, %v1752_v54   ;;  %1642 = vperm.xlu0 %2357, %v1621_v30   ;;  %v1586_v49 = vmul.f32 %v2451_v22, %v1547_v46  ;;  %v1622_v44 = vmul.f32 %v1606_v52, %v3201_v58  ;;  %v1532_v58 = vsub.f32 0.0, %v1516_v50  ;;  %v3691_v50 = vld [vmem:[#allocation7_spill] sm:$0xff] }
 0x4e0   : > { %v1408_v35 = vpop.permute.xlu1 %1407  ;;  %v1471_v53 = vmul.f32 %v3095_v51, %v3095_v51  ;;  %2456 = vrcp.f32 %v1562_v16  ;;  %v1469_v46 = vmul.f32 %v3115_v0, %v3115_v0  ;;  %v1229_v10 = vmul.f32 %v3105_v33, %v3105_v33 }
 0x4e1   : > { %v1513_v48 = vadd.f32 %v1497_v37, %v969_v26  ;;  %v1450_v59 = vadd.f32 %v1408_v35, %v1194_v13  ;;  %v1548_v2 = vmax.f32 %v1532_v58, 0.0  ;;  %v1755_v23 = vadd.f32 %v1739_v18, %v3033_v29  ;;  %v3697_v18 = vld [vmem:[#allocation10_spill] sm:$0xff] }
 0x4e2   : > { %v2453_v60 = vpop.eup %2452  ;;  %v3280_v54 = vadd.f32 %v1471_v53, %v1231_v4  ;;  %v1737_v30 = vmul.f32 %v1576_v55, %v3030_v17  ;;  %v1611_v26 = vmul.f32 %v1586_v49, %v1586_v49  ;;  %v3292_v22 = vadd.f32 %v1469_v46, %v1229_v10  ;;  %v3695_v4 = vld [vmem:[#allocation18_spill] sm:$0xff]  ;;  %v3698_v10 = vld [vmem:[#allocation17_spill] sm:$0xff] }
 0x4e3   : > { %v1529_v34 = vsub.f32 0.0, %v1513_v48  ;;  %v1498_v43 = vadd.f32 %v1450_v59, %v2940_v21  ;;  %1647 = vperm.xlu1 %2356, %v1622_v44   ;;  %1915 = vrot.lane.b32.xlu0 %v1882_v40, %s2486_s20  ;;  %v1887_v21 = vmul.f32 %v1586_v49, %v3055_v31  ;;  %v975_v35 = vsub.f32 1.0, %v3691_v50  ;;  %v3692_v40 = vld [vmem:[#allocation22_spill] sm:$0xff]  ;;  %v3702_v50 = vld [vmem:[#allocation11_spill] sm:$0xff] }
 0x4e4   : > { %v1418_v32 = vpop.permute.xlu0 %1417  ;;  %v2455_v37 = vpop.eup %2454  ;;  %v1567_v13 = vmax.f32 %v3280_v54, 1e-12  ;;  %v1197_v12 = vmul.f32 %v3105_v33, %v3692_v40  ;;  %v1627_v53 = vmul.f32 %v1611_v26, %v3212_v56 }
 0x4e5   : > { %v1545_v1 = vmax.f32 %v1529_v34, 0.0  ;;  %v1514_v45 = vadd.f32 %v1498_v43, %v970_v39  ;;  %v1455_v42 = vadd.f32 %v1418_v32, %v1199_v27  ;;  %v1588_v17 = vmul.f32 %v2455_v37, %v1548_v2  ;;  %v3693_v39 = vld [vmem:[#allocation20_spill] sm:$0xff]  ;;  %v3694_v27 = vld [vmem:[#allocation19_spill] sm:$0xff]  ;;  %v3696_v32 = vld [vmem:[#allocation6_spill] sm:$0xff] }
 0x4e6   : > { %2458 = vrcp.f32 %v1567_v13  ;;  %v1472_v34 = vmul.f32 %v3693_v39, %v3693_v39  ;;  %v1565_v43 = vmax.f32 %v3292_v22, 1e-12  ;;  %v1200_v58 = vmul.f32 %v3695_v4, %v3694_v27  ;;  %v3701_v37 = vld [vmem:[#allocation23_spill] sm:$0xff] }
 0x4e7   : > { %v1582_v6 = vmul.f32 %v2453_v60, %v1545_v1  ;;  %1657 = vperm.xlu0 %2357, %v1624_v5   ;;  %1925 = vrot.lane.b32.xlu1 %v1887_v21, %s2486_s20  ;;  %v1530_v31 = vsub.f32 0.0, %v1514_v45  ;;  %v1503_v52 = vadd.f32 %v1455_v42, %v2970_v38  ;;  %v1753_v38 = vadd.f32 %v1737_v30, %v3041_v28  ;;  %v3699_v30 = vld [vmem:[#allocation24_spill] sm:$0xff] }
 0x4e8   : > { %v1420_v44 = vpop.permute.xlu1 %1419  ;;  %v973_v5 = vsub.f32 1.0, %v3696_v32  ;;  %v1888_v2 = vmul.f32 %v1588_v17, %v3698_v10  ;;  %2460 = vrcp.f32 %v1565_v43 }
 0x4e9   : > { %v1885_v7 = vmul.f32 %v1582_v6, %v3075_v62  ;;  %v1742_v62 = vmul.f32 %v1586_v49, %v3045_v36  ;;  %v1546_v48 = vmax.f32 %v1530_v31, 0.0  ;;  %v1519_v59 = vadd.f32 %v1503_v52, %v975_v35 }
 0x4ea   : > { %v2457_v36 = vpop.eup %2456  ;;  %v1232_v49 = vmul.f32 %v3695_v4, %v3695_v4  ;;  %v1456_v56 = vadd.f32 %v1420_v44, %v1200_v58  ;;  %v1609_v42 = vmul.f32 %v1582_v6, %v1582_v6  ;;  %v1470_v31 = vmul.f32 %v3699_v30, %v3699_v30 }
 0x4eb   : > { %1786 = vperm.xlu0 %2357, %v1755_v23   ;;  %1921 = vrot.lane.b32.xlu1 %v1885_v7, %s2486_s20  ;;  %v1758_v45 = vadd.f32 %v1742_v62, %v3053_v9  ;;  %v1584_v21 = vmul.f32 %v2457_v36, %v1546_v48  ;;  %v1535_v60 = vsub.f32 0.0, %v1519_v59  ;;  %v3700_v7 = vld [vmem:[#allocation21_spill] sm:$0xff] }
 0x4ec   : > { %v1414_v55 = vpop.permute.xlu0 %1413  ;;  %v3312_v23 = vadd.f32 %v1472_v34, %v1232_v49  ;;  %v1230_v26 = vmul.f32 %v3700_v7, %v3700_v7  ;;  %v1198_v13 = vmul.f32 %v3700_v7, %v3701_v37  ;;  %v1504_v35 = vadd.f32 %v1456_v56, %v3702_v50  ;;  %v3703_v34 = vld [vmem:[#allocation3_spill] sm:$0xff]  ;;  %v3705_v49 = vld [vmem:[#allocation2_spill] sm:$0xff] }
 0x4ed   : > { %v1453_v16 = vadd.f32 %v1414_v55, %v1197_v12  ;;  %v1625_v12 = vmul.f32 %v1609_v42, %v3233_v20  ;;  %v1612_v55 = vmul.f32 %v1588_v17, %v1588_v17  ;;  %v1551_v62 = vmax.f32 %v1535_v60, 0.0 }
 0x4ee   : > { %v1886_v44 = vmul.f32 %v1584_v21, %v3083_v19  ;;  %v976_v43 = vsub.f32 1.0, %v3703_v34  ;;  %v974_v56 = vsub.f32 1.0, %v3705_v49  ;;  %v1610_v42 = vmul.f32 %v1584_v21, %v1584_v21 }
 0x4ef   : > { %v1501_v1 = vadd.f32 %v1453_v16, %v3697_v18  ;;  %1776 = vperm.xlu0 %2357, %v1753_v38   ;;  %1672 = vperm.xlu1 %2356, %v1627_v53   ;;  %v1740_v38 = vmul.f32 %v1582_v6, %v3065_v41  ;;  %v1568_v16 = vmax.f32 %v3312_v23, 1e-12  ;;  %v3326_v53 = vadd.f32 %v1470_v31, %v1230_v26  ;;  %v3704_v18 = vld [vmem:[#allocation12_spill] sm:$0xff] }
 0x4f0   : > { %v1416_v52 = vpop.permute.xlu1 %1415  ;;  %v2459_v58 = vpop.eup %2458  ;;  %v1628_v20 = vmul.f32 %v1612_v55, %v3240_v15  ;;  %v1743_v41 = vmul.f32 %v1588_v17, %v3050_v63  ;;  %v1626_v10 = vmul.f32 %v1610_v42, %v3259_v25 }
 0x4f1   : > { %v1517_v46 = vadd.f32 %v1501_v1, %v973_v5  ;;  %v1454_v59 = vadd.f32 %v1416_v52, %v1198_v13  ;;  %v1756_v32 = vadd.f32 %v1740_v38, %v3073_v14  ;;  %v3333_v6 = vmul.f32 %v2459_v58, %v1551_v62 }
 0x4f2   : > { %v1520_v5 = vadd.f32 %v1504_v35, %v976_v43  ;;  %2462 = vrcp.f32 %v1568_v16  ;;  %v1566_v36 = vmax.f32 %v3326_v53, 1e-12  ;;  %v1759_v15 = vadd.f32 %v1743_v41, %v3061_v8 }
 0x4f3   : > { %1927 = vrot.lane.b32.xlu0 %v1888_v2, %s2486_s20  ;;  %1801 = vperm.xlu1 %2356, %v1758_v45   ;;  %v1533_v48 = vsub.f32 0.0, %v1517_v46  ;;  %v1502_v1 = vadd.f32 %v1454_v59, %v3704_v18  ;;  %v2461_v45 = vpop.eup %2460  ;;  %v1891_v17 = vmul.f32 %v3333_v6, %v3095_v51  ;;  %v1741_v2 = vmul.f32 %v1584_v21, %v3070_v24  ;;  %v3706_v21 = vld [vmem:[#allocation29_spill] sm:$0xff] }
 0x4f4   : > { %v1536_v60 = vsub.f32 0.0, %v1520_v5  ;;  %2464 = vrcp.f32 %v1566_v36  ;;  %v1615_v13 = vmul.f32 %v3333_v6, %v3333_v6  ;;  %v1475_v55 = vmul.f32 %v3706_v21, %v3706_v21  ;;  %v3707_v59 = vld [vmem:[#allocation25_spill] sm:$0xff] }
 0x4f5   : > { %v1549_v19 = vmax.f32 %v1533_v48, 0.0  ;;  %v1518_v63 = vadd.f32 %v1502_v1, %v974_v56  ;;  %v1757_v50 = vadd.f32 %v1741_v2, %v3081_v11  ;;  %v3711_v56 = vld [vmem:[#allocation9_spill] sm:$0xff]  ;;  %v3714_v2 = vld [vmem:[#allocation8_spill] sm:$0xff] }
 0x4f6   : > { %v1552_v31 = vmax.f32 %v1536_v60, 0.0  ;;  %v1631_v25 = vmul.f32 %v1615_v13, %v3280_v54  ;;  %v3708_v54 = vld [vmem:[#allocation27_spill] sm:$0xff]  ;;  %v3713_v60 = vld [vmem:[#allocation30_spill] sm:$0xff] }
 0x4f7   : > { %1923 = vrot.lane.b32.xlu0 %v1886_v44, %s2486_s20  ;;  %1662 = vperm.xlu1 %2356, %v1625_v12   ;;  %v3339_v46 = vmul.f32 %v2461_v45, %v1549_v19  ;;  %v1534_v52 = vsub.f32 0.0, %v1518_v63  ;;  %v1235_v44 = vmul.f32 %v3707_v59, %v3707_v59  ;;  %v1473_v16 = vmul.f32 %v3708_v54, %v3708_v54  ;;  %v3710_v19 = vld [vmem:[#allocation28_spill] sm:$0xff] }
 0x4f8   : > { %v1203_v18 = vmul.f32 %v3707_v59, %v3710_v19  ;;  %v979_v45 = vsub.f32 1.0, %v3711_v56 }
 0x4f9   : > { %v1889_v26 = vmul.f32 %v3339_v46, %v3115_v0  ;;  %v1550_v12 = vmax.f32 %v1534_v52, 0.0  ;;  %v1613_v24 = vmul.f32 %v3339_v46, %v3339_v46  ;;  %v1491_v34 = vadd.f32 %v1475_v55, %v1235_v44  ;;  %v3717_v44 = vld [vmem:[#allocation32_spill] sm:$0xff] }
 0x4fb   : > { %1677 = vperm.xlu0 %2357, %v1628_v20   ;;  %1791 = vperm.xlu1 %2356, %v1756_v32   ;;  %v1629_v48 = vmul.f32 %v1613_v24, %v3292_v22  ;;  %v3709_v20 = vld [vmem:[#allocation26_spill] sm:$0xff]  ;;  %v1571_v32 = vmax.f32 %v1491_v34, 1e-12  ;;  %v3716_v24 = vld [vmem:[#allocation33_spill] sm:$0xff] }
 0x4fc   : > { %v2463_v51 = vpop.eup %2462 }
 0x4fd   : > { %v3352_v35 = vmul.f32 %v2463_v51, %v1552_v31  ;;  %2466 = vrcp.f32 %v1571_v32  ;;  %v977_v31 = vsub.f32 1.0, %v3714_v2  ;;  %v3719_v32 = vld [vmem:[#allocation31_spill] sm:$0xff] }
 0x4fe   : > { %v2465_v0 = vpop.eup %2464 }
 0x4ff   : > { %1806 = vperm.xlu0 %2357, %v1759_v15   ;;  %1933 = vrot.lane.b32.xlu1 %v1891_v17, %s2486_s20  ;;  %v3359_v38 = vmul.f32 %v2465_v0, %v1550_v12  ;;  %v1892_v62 = vmul.f32 %v3352_v35, %v3693_v39  ;;  %v1616_v58 = vmul.f32 %v3352_v35, %v3352_v35  ;;  %v3712_v15 = vld [vmem:[#allocation13_spill] sm:$0xff] }
 0x500   : > { %v1233_v39 = vmul.f32 %v3709_v20, %v3709_v20  ;;  %v1474_v0 = vmul.f32 %v3716_v24, %v3716_v24 }
 0x501   : > { %v1890_v43 = vmul.f32 %v3359_v38, %v3699_v30  ;;  %v1632_v41 = vmul.f32 %v1616_v58, %v3312_v23  ;;  %v1614_v5 = vmul.f32 %v3359_v38, %v3359_v38  ;;  %v1201_v23 = vmul.f32 %v3709_v20, %v3713_v60 }
 0x502   : > { %v1489_v22 = vadd.f32 %v1473_v16, %v1233_v39  ;;  %v1234_v16 = vmul.f32 %v3717_v44, %v3717_v44 }
 0x503   : > { %1667 = vperm.xlu0 %2357, %v1626_v10   ;;  %1929 = vrot.lane.b32.xlu1 %v1889_v26, %s2486_s20  ;;  %v1630_v49 = vmul.f32 %v1614_v5, %v3326_v53  ;;  %v3715_v26 = vld [vmem:[#allocation14_spill] sm:$0xff] }
 0x504   : > { %v1569_v30 = vmax.f32 %v1489_v22, 1e-12  ;;  %v3398_v5 = vadd.f32 %v1474_v0, %v1234_v16  ;;  %v1746_v16 = vmul.f32 %v3333_v6, %v3085_v3 }
 0x506   : > { %2468 = vrcp.f32 %v1569_v30 }
 0x507   : > { %1796 = vperm.xlu0 %2357, %v1757_v50   ;;  %1692 = vperm.xlu1 %2356, %v1631_v25   ;;  %v2467_v53 = vpop.eup %2466 }
 0x50b   : > { %1935 = vrot.lane.b32.xlu0 %v1892_v62, %s2486_s20  ;;  %1682 = vperm.xlu1 %2356, %v1629_v48  }
 0x50f   : > { %1931 = vrot.lane.b32.xlu0 %v1890_v43, %s2486_s20  ;;  %v3718_v43 = vld [vmem:[#allocation35_spill] sm:$0xff] }
 0x510   : > { %v2469_v48 = vpop.eup %2468  ;;  %v1476_v58 = vmul.f32 %v3718_v43, %v3718_v43 }
 0x513   : > { %1697 = vperm.xlu0 %2357, %v1632_v41   ;;  %v1236_v41 = vmul.f32 %v3719_v32, %v3719_v32 }
 0x514   : > { %v1426_v1 = vpop.permute.xlu0 %1425 }
 0x515   : > { %v1459_v36 = vadd.f32 %v1426_v1, %v1203_v18  ;;  %v1492_v1 = vadd.f32 %v1476_v58, %v1236_v41 }
 0x517   : > { %v1507_v42 = vadd.f32 %v1459_v36, %v3712_v15  ;;  %1687 = vperm.xlu0 %2357, %v1630_v49   ;;  %v1570_v49 = vmax.f32 %v3398_v5, 1e-12 }
 0x518   : > { %v1422_v63 = vpop.permute.xlu0 %1421 }
 0x519   : > { %v1523_v17 = vadd.f32 %v1507_v42, %v979_v45  ;;  %v1457_v10 = vadd.f32 %v1422_v63, %v1201_v23  ;;  %v1572_v23 = vmax.f32 %v1492_v1, 1e-12  ;;  %v3721_v63 = vld [vmem:[#allocation5_spill] sm:$0xff]  ;;  %2470 = vrcp.f32 %v1570_v49 }
 0x51b   : > { %v1539_v52 = vsub.f32 0.0, %v1523_v17  ;;  %v1505_v13 = vadd.f32 %v1457_v10, %v3715_v26  ;;  %v980_v17 = vsub.f32 1.0, %v3721_v63  ;;  %v3722_v10 = vld [vmem:[#allocation15_spill] sm:$0xff]  ;;  %2472 = vrcp.f32 %v1572_v23 }
 0x51d   : > { %v1555_v51 = vmax.f32 %v1539_v52, 0.0  ;;  %v1521_v50 = vadd.f32 %v1505_v13, %v977_v31 }
 0x51f   : > { %v1602_v12 = vmul.f32 %v2467_v53, %v1555_v51  ;;  %v1537_v25 = vsub.f32 0.0, %v1521_v50  ;;  %v1744_v50 = vmul.f32 %v3339_v46, %v3105_v33 }
 0x521   : > { %v1553_v55 = vmax.f32 %v1537_v25, 0.0  ;;  %v1895_v62 = vmul.f32 %v1602_v12, %v3706_v21  ;;  %v1619_v30 = vmul.f32 %v1602_v12, %v1602_v12  ;;  %v3720_v21 = vld [vmem:[#allocation34_spill] sm:$0xff]  ;;  %v3725_v25 = vld [vmem:[#allocation16_spill] sm:$0xff]  ;;  %v1750_v33 = vmul.f32 %v1602_v12, %v3707_v59 }
 0x522   : > { %v1204_v36 = vmul.f32 %v3719_v32, %v3720_v21  ;;  %v1745_v59 = vmul.f32 %v3359_v38, %v3700_v7 }
 0x523   : > { %v1598_v39 = vmul.f32 %v2469_v48, %v1553_v55  ;;  %1941 = vrot.lane.b32.xlu1 %v1895_v62, %s2486_s20  ;;  %v1635_v15 = vmul.f32 %v1619_v30, %v1491_v34  ;;  %v3724_v34 = vld [vmem:[#allocation4_spill] sm:$0xff]  ;;  %v1760_v48 = vadd.f32 %v1744_v50, %v3692_v40  ;;  %v2471_v46 = vpop.eup %2470 }
 0x524   : > { %v978_v53 = vsub.f32 1.0, %v3724_v34 }
 0x525   : > { %v1893_v18 = vmul.f32 %v1598_v39, %v3708_v54  ;;  %v1617_v42 = vmul.f32 %v1598_v39, %v1598_v39  ;;  %v3723_v54 = vld [vmem:[#allocation36_spill] sm:$0xff] }
 0x526   : > { %v1202_v31 = vmul.f32 %v3717_v44, %v3723_v54 }
 0x527   : > { %1937 = vrot.lane.b32.xlu1 %v1893_v18, %s2486_s20  ;;  %v1633_v51 = vmul.f32 %v1617_v42, %v1489_v22  ;;  %v1762_v18 = vadd.f32 %v1746_v16, %v3093_v47  ;;  %v1747_v42 = vmul.f32 %v3352_v35, %v3695_v4 }
 0x528   : > { %v1428_v56 = vpop.permute.xlu1 %1427 }
 0x529   : > { %v1460_v45 = vadd.f32 %v1428_v56, %v1204_v36  ;;  %v2473_v36 = vpop.eup %2472  ;;  %v1763_v23 = vadd.f32 %v1747_v42, %v3694_v27 }
 0x52b   : > { %v1508_v2 = vadd.f32 %v1460_v45, %v3722_v10  ;;  %1712 = vperm.xlu1 %2356, %v1635_v15   ;;  %v1766_v45 = vadd.f32 %v1750_v33, %v3710_v19  ;;  %v1748_v15 = vmul.f32 %v1598_v39, %v3709_v20  ;;  %v2487_v39 = vmov 1  }
 0x52c   : > { %v1424_v52 = vpop.permute.xlu1 %1423 }
 0x52d   : > { %v1524_v26 = vadd.f32 %v1508_v2, %v980_v17  ;;  %v1458_v13 = vadd.f32 %v1424_v52, %v1202_v31  ;;  %v1764_v6 = vadd.f32 %v1748_v15, %v3713_v60  ;;  %v1637_v2 = vlaneseq }
 0x52f   : > { %v1506_v0 = vadd.f32 %v1458_v13, %v3725_v25  ;;  %1702 = vperm.xlu1 %2356, %v1633_v51   ;;  %v1540_v55 = vsub.f32 0.0, %v1524_v26 }
 0x531   : > { %v1522_v62 = vadd.f32 %v1506_v0, %v978_v53  ;;  %v1556_v41 = vmax.f32 %v1540_v55, 0.0 }
 0x533   : > { %v1538_v58 = vsub.f32 0.0, %v1522_v62  ;;  %1811 = vperm.xlu1 %2356, %v1760_v48   ;;  %v1604_v49 = vmul.f32 %v2473_v36, %v1556_v41 }
 0x535   : > { %v1554_v22 = vmax.f32 %v1538_v58, 0.0  ;;  %v1896_v3 = vmul.f32 %v1604_v49, %v3718_v43  ;;  %v1620_v63 = vmul.f32 %v1604_v49, %v1604_v49  ;;  %v1751_v17 = vmul.f32 %v1604_v49, %v3719_v32 }
 0x537   : > { %v1600_v30 = vmul.f32 %v2471_v46, %v1554_v22  ;;  %1821 = vperm.xlu1 %2356, %v1762_v18   ;;  %v1636_v38 = vmul.f32 %v1620_v63, %v1492_v1  ;;  %v1767_v4 = vadd.f32 %v1751_v17, %v3720_v21 }
 0x539   : > { %v1894_v56 = vmul.f32 %v1600_v30, %v3716_v24  ;;  %v1761_v24 = vadd.f32 %v1745_v59, %v3701_v37  ;;  %v1749_v52 = vmul.f32 %v1600_v30, %v3717_v44 }
 0x53b   : > { %1939 = vrot.lane.b32.xlu0 %v1894_v56, %s2486_s20  ;;  %1841 = vperm.xlu1 %2356, %v1766_v45   ;;  %v1765_v1 = vadd.f32 %v1749_v52, %v3723_v54 }
 0x53d   : > { %v1918_v12 = vpop.permute.xlu1 %1917 }
 0x53e   : > { %v1963_v20 = vadd.f32 %v1918_v12, %v3009_v61  ;;  %v1618_v61 = vmul.f32 %v1600_v30, %v1600_v30 }
 0x53f   : > { %1943 = vrot.lane.b32.xlu0 %v1896_v3, %s2486_s20  ;;  %1831 = vperm.xlu1 %2356, %v1764_v6  }
 0x540   : > { %v1634_v31 = vmul.f32 %v1618_v61, %v3398_v5 }
 0x543   : > { %1816 = vperm.xlu0 %2357, %v1761_v24   ;;  %2358 = vset.pattern.permute.xlu1 %v2487_v39 }
 0x544   : > { %1990 = vperm.xlu1 %2358, %v1963_v20  }
 0x545   : > { %v1914_v43 = vpop.permute.xlu1 %1913 }
 0x546   : > { %v1961_v7 = vadd.f32 %v1914_v43, %v3021_v57  ;;  %v3438_v57 = vand.u32 127, %v1637_v2 }
 0x547   : > { %1826 = vperm.xlu0 %2357, %v1763_v23  }
 0x548   : > { %1980 = vperm.xlu1 %2358, %v1961_v7   ;;  %vm1639_vm1 = vcmp.eq.s32.totalorder %v3438_v57, 2  ;;  %vm1768_vm2 = vcmp.eq.s32.totalorder %v3438_v57, 0  ;;  %vm1977_vm3 = vcmp.eq.s32.totalorder %v3438_v57, 1 }
 0x54b   : > { %1717 = vperm.xlu0 %2357, %v1636_v38  }
 0x54d   : > { %v1920_v10 = vpop.permute.xlu0 %1919 }
 0x54e   : > { %v1964_v35 = vadd.f32 %v1920_v10, %v3033_v29 }
 0x54f   : > { %1846 = vperm.xlu0 %2357, %v1767_v4  }
 0x550   : > { %1995 = vperm.xlu1 %2358, %v1964_v35  }
 0x553   : > { %1707 = vperm.xlu0 %2357, %v1634_v31  }
 0x556   : > { %v1653_v32 = vpop.permute.xlu1 %1652 }
 0x557   : > { %1836 = vperm.xlu0 %2357, %v1765_v1   ;;  %v1722_v29 = vsel %vm1639_vm1, %v1653_v32, 0.0 }
 0x55a   : > { %v1782_v26 = vpop.permute.xlu1 %1781 }
 0x55b   : > { %v1851_v5 = vsel %vm1768_vm2, %v1782_v26, 0.0  ;;  %2359 = vset.pattern.permute.xlu0 %v2487_v39 }
 0x55c   : > { %v3447_v44 = vadd.f32 %v1851_v5, %v1722_v29 }
 0x55e   : > { %v1772_v13 = vpop.permute.xlu1 %1771  ;;  %v1643_v51 = vpop.permute.xlu0 %1642 }
 0x55f   : > { %v1849_v50 = vsel %vm1768_vm2, %v1772_v13, 0.0  ;;  %v1720_v34 = vsel %vm1639_vm1, %v1643_v51, 0.0 }
 0x560   : > { %v3453_v53 = vadd.f32 %v1849_v50, %v1720_v34 }
 0x562   : > { %v1648_v25 = vpop.permute.xlu1 %1647  ;;  %v1916_v0 = vpop.permute.xlu0 %1915 }
 0x563   : > { %v1962_v55 = vadd.f32 %v1916_v0, %v3041_v28  ;;  %v1721_v36 = vsel %vm1639_vm1, %v1648_v25, 0.0 }
 0x565   : > { %1985 = vperm.xlu0 %2359, %v1962_v55  }
 0x566   : > { %v1926_v62 = vpop.permute.xlu1 %1925  ;;  %v1658_v48 = vpop.permute.xlu0 %1657 }
 0x567   : > { %v1967_v16 = vadd.f32 %v1926_v62, %v3053_v9  ;;  %v1723_v22 = vsel %vm1639_vm1, %v1658_v48, 0.0 }
 0x569   : > { %2010 = vperm.xlu0 %2359, %v1967_v16  }
 0x56a   : > { %v1922_v58 = vpop.permute.xlu1 %1921  ;;  %v1787_v41 = vpop.permute.xlu0 %1786 }
 0x56b   : > { %v1965_v18 = vadd.f32 %v1922_v58, %v3073_v14  ;;  %v1852_v33 = vsel %vm1768_vm2, %v1787_v41, 0.0 }
 0x56c   : > { %v3462_v46 = vadd.f32 %v1852_v33, %v1723_v22 }
 0x56d   : > { %2000 = vperm.xlu0 %2359, %v1965_v18  }
 0x56e   : > { %v1673_v28 = vpop.permute.xlu1 %1672  ;;  %v1777_v30 = vpop.permute.xlu0 %1776 }
 0x56f   : > { %v1850_v9 = vsel %vm1768_vm2, %v1777_v30, 0.0  ;;  %v1726_v14 = vsel %vm1639_vm1, %v1673_v28, 0.0 }
 0x570   : > { %v3468_v49 = vadd.f32 %v1850_v9, %v1721_v36 }
 0x572   : > { %v1802_v56 = vpop.permute.xlu1 %1801  ;;  %v1928_v45 = vpop.permute.xlu0 %1927 }
 0x573   : > { %v1855_v15 = vsel %vm1768_vm2, %v1802_v56, 0.0  ;;  %v1968_v3 = vadd.f32 %v1928_v45, %v3061_v8 }
 0x574   : > { %v3475_v6 = vadd.f32 %v1855_v15, %v1726_v14 }
 0x575   : > { %2015 = vperm.xlu1 %2358, %v1968_v3  }
 0x576   : > { %v1663_v59 = vpop.permute.xlu1 %1662  ;;  %v1924_v12 = vpop.permute.xlu0 %1923 }
 0x577   : > { %v1966_v24 = vadd.f32 %v1924_v12, %v3081_v11  ;;  %v1724_v39 = vsel %vm1639_vm1, %v1663_v59, 0.0 }
 0x579   : > { %2005 = vperm.xlu1 %2358, %v1966_v24  }
 0x57a   : > { %v1792_v42 = vpop.permute.xlu1 %1791  ;;  %v1678_v20 = vpop.permute.xlu0 %1677 }
 0x57b   : > { %v1853_v43 = vsel %vm1768_vm2, %v1792_v42, 0.0  ;;  %v1727_v7 = vsel %vm1639_vm1, %v1678_v20, 0.0 }
 0x57c   : > { %v3482_v23 = vadd.f32 %v1853_v43, %v1724_v39 }
 0x57e   : > { %v1934_v63 = vpop.permute.xlu1 %1933  ;;  %v1807_v8 = vpop.permute.xlu0 %1806 }
 0x57f   : > { %v1971_v38 = vadd.f32 %v1934_v63, %v3093_v47  ;;  %v1856_v11 = vsel %vm1768_vm2, %v1807_v8, 0.0 }
 0x580   : > { %v3489_v17 = vadd.f32 %v1856_v11, %v1727_v7 }
 0x581   : > { %2030 = vperm.xlu0 %2359, %v1971_v38  }
 0x582   : > { %v1930_v10 = vpop.permute.xlu1 %1929  ;;  %v1668_v4 = vpop.permute.xlu0 %1667 }
 0x583   : > { %v1969_v61 = vadd.f32 %v1930_v10, %v3692_v40  ;;  %v1725_v2 = vsel %vm1639_vm1, %v1668_v4, 0.0 }
 0x585   : > { %2020 = vperm.xlu0 %2359, %v1969_v61  }
 0x586   : > { %v1797_v35 = vpop.permute.xlu0 %1796  ;;  %v1693_v1 = vpop.permute.xlu1 %1692 }
 0x587   : > { %v1854_v31 = vsel %vm1768_vm2, %v1797_v35, 0.0  ;;  %v1730_v22 = vsel %vm1639_vm1, %v1693_v1, 0.0 }
 0x588   : > { %v3496_v52 = vadd.f32 %v1854_v31, %v1725_v2 }
 0x58a   : > { %v1936_v47 = vpop.permute.xlu0 %1935  ;;  %v1683_v5 = vpop.permute.xlu1 %1682 }
 0x58b   : > { %v1972_v32 = vadd.f32 %v1936_v47, %v3694_v27 }
 0x58d   : > { %2035 = vperm.xlu1 %2358, %v1972_v32  }
 0x58e   : > { %v1932_v26 = vpop.permute.xlu0 %1931 }
 0x58f   : > { %v1970_v29 = vadd.f32 %v1932_v26, %v3701_v37 }
 0x591   : > { %2025 = vperm.xlu1 %2358, %v1970_v29  }
 0x592   : > { %v3502_v34 = vpop.permute.xlu0 %1697 }
 0x595   : > { %v1942_v40 = vpop.permute.xlu1 %1941 }
 0x596   : > { %v1975_v50 = vadd.f32 %v1942_v40, %v3710_v19  ;;  %v1688_v25 = vpop.permute.xlu0 %1687 }
 0x597   : > { %v1729_v15 = vsel %vm1639_vm1, %v1688_v25, 0.0 }
 0x599   : > { %v1938_v13 = vpop.permute.xlu1 %1937 }
 0x59a   : > { %v1973_v51 = vadd.f32 %v1938_v13, %v3713_v60  ;;  %v1728_v60 = vsel %vm1639_vm1, %v1683_v5, 0.0 }
 0x59c   : > { %2040 = vperm.xlu0 %2359, %v1973_v51  }
 0x5a0   : > { %2050 = vperm.xlu0 %2359, %v1975_v50  }
 0x5aa   : > { %v1713_v0 = vpop.permute.xlu1 %1712 }
 0x5ab   : > { %v1734_v33 = vsel %vm1639_vm1, %v1713_v0, 0.0 }
 0x5ad   : > { %v1940_v55 = vpop.permute.xlu0 %1939 }
 0x5ae   : > { %v1974_v27 = vadd.f32 %v1940_v55, %v3723_v54  ;;  %v1703_v62 = vpop.permute.xlu1 %1702 }
 0x5af   : > { %v1732_v9 = vsel %vm1639_vm1, %v1703_v62, 0.0 }
 0x5b0   : > { %2045 = vperm.xlu1 %2358, %v1974_v27  }
 0x5b1   : > { %v1944_v37 = vpop.permute.xlu0 %1943 }
 0x5b2   : > { %v1976_v48 = vadd.f32 %v1944_v37, %v3720_v21  ;;  %v1812_v16 = vpop.permute.xlu1 %1811 }
 0x5b3   : > { %v1857_v19 = vsel %vm1768_vm2, %v1812_v16, 0.0  ;;  %v1731_v16 = vsel %vm1639_vm1, %v3502_v34, 0.0 }
 0x5b4   : > { %v3510_v58 = vadd.f32 %v1857_v19, %v1728_v60  ;;  %2055 = vperm.xlu1 %2358, %v1976_v48  }
 0x5b6   : > { %v1822_v41 = vpop.permute.xlu1 %1821 }
 0x5b7   : > { %v1859_v54 = vsel %vm1768_vm2, %v1822_v41, 0.0 }
 0x5b8   : > { %v1875_v18 = vadd.f32 %v1859_v54, %v1730_v22 }
 0x5ba   : > { %v1842_v21 = vpop.permute.xlu1 %1841 }
 0x5bb   : > { %v1863_v28 = vsel %vm1768_vm2, %v1842_v21, 0.0 }
 0x5bc   : > { %v3520_v30 = vadd.f32 %v1863_v28, %v1734_v33 }
 0x5be   : > { %v1832_v36 = vpop.permute.xlu1 %1831 }
 0x5bf   : > { %v1861_v56 = vsel %vm1768_vm2, %v1832_v36, 0.0 }
 0x5c0   : > { %v3526_v45 = vadd.f32 %v1861_v56, %v1732_v9 }
 0x5c2   : > { %v1817_v14 = vpop.permute.xlu0 %1816 }
 0x5c3   : > { %v1858_v3 = vsel %vm1768_vm2, %v1817_v14, 0.0  ;;  %v1991_v59 = vpop.permute.xlu1 %1990 }
 0x5c4   : > { %v1874_v12 = vadd.f32 %v1858_v3, %v1729_v15  ;;  %v2060_v24 = vsel %vm1977_vm3, %v1991_v59, 0.0 }
 0x5c5   : > { %v2076_v42 = vadd.f32 %v2060_v24, %v3447_v44 }
 0x5c6   : > { %v1827_v20 = vpop.permute.xlu0 %1826 }
 0x5c7   : > { %2092 = vst [vmem:[%s3537_s23 + $0x10] sm:$0xff] %v2076_v42  ;;  %v1981_v39 = vpop.permute.xlu1 %1980 }
 0x5c8   : > { %v2058_v43 = vsel %vm1977_vm3, %v1981_v39, 0.0 }
 0x5c9   : > { %v2074_v63 = vadd.f32 %v2058_v43, %v3453_v53 }
 0x5ca   : > { %v1718_v8 = vpop.permute.xlu0 %1717 }
 0x5cb   : > { %2090 = vst [vmem:[%s3537_s23] sm:$0xff] %v2074_v63  ;;  %v1735_v38 = vsel %vm1639_vm1, %v1718_v8, 0.0 }
 0x5ce   : > { %v1847_v7 = vpop.permute.xlu0 %1846 }
 0x5cf   : > { %v1864_v11 = vsel %vm1768_vm2, %v1847_v7, 0.0  ;;  %v1996_v44 = vpop.permute.xlu1 %1995 }
 0x5d0   : > { %v1880_v10 = vadd.f32 %v1864_v11, %v1735_v38  ;;  %v2061_v4 = vsel %vm1977_vm3, %v1996_v44, 0.0 }
 0x5d1   : > { %v2077_v61 = vadd.f32 %v2061_v4, %v3462_v46 }
 0x5d2   : > { %v1708_v35 = vpop.permute.xlu0 %1707 }
 0x5d3   : > { %2093 = vst [vmem:[%s3537_s23 + $0x18] sm:$0xff] %v2077_v61  ;;  %v1733_v2 = vsel %vm1639_vm1, %v1708_v35, 0.0 }
 0x5d6   : > { %v1837_v53 = vpop.permute.xlu0 %1836 }
 0x5d7   : > { %v1862_v31 = vsel %vm1768_vm2, %v1837_v53, 0.0 }
 0x5d8   : > { %v1878_v47 = vadd.f32 %v1862_v31, %v1733_v2 }
 0x5e4   : > { %v1986_v1 = vpop.permute.xlu0 %1985 }
 0x5e5   : > { %v2059_v32 = vsel %vm1977_vm3, %v1986_v1, 0.0 }
 0x5e6   : > { %v2075_v26 = vadd.f32 %v2059_v32, %v3468_v49 }
 0x5e8   : > { %2091 = vst [vmem:[%s3537_s23 + $0x8] sm:$0xff] %v2075_v26  ;;  %v2011_v46 = vpop.permute.xlu0 %2010 }
 0x5e9   : > { %v2064_v29 = vsel %vm1977_vm3, %v2011_v46, 0.0 }
 0x5ea   : > { %v2080_v5 = vadd.f32 %v2064_v29, %v3475_v6 }
 0x5ec   : > { %2096 = vst [vmem:[%s3537_s23 + $0x30] sm:$0xff] %v2080_v5  ;;  %v2001_v40 = vpop.permute.xlu0 %2000 }
 0x5ed   : > { %v2062_v13 = vsel %vm1977_vm3, %v2001_v40, 0.0 }
 0x5ee   : > { %v2078_v51 = vadd.f32 %v2062_v13, %v3482_v23 }
 0x5f0   : > { %2094 = vst [vmem:[%s3537_s23 + $0x20] sm:$0xff] %v2078_v51 }
 0x5f4   : > { %v2016_v50 = vpop.permute.xlu1 %2015 }
 0x5f5   : > { %v2065_v49 = vsel %vm1977_vm3, %v2016_v50, 0.0 }
 0x5f6   : > { %v2081_v25 = vadd.f32 %v2065_v49, %v3489_v17 }
 0x5f8   : > { %2097 = vst [vmem:[%s3537_s23 + $0x38] sm:$0xff] %v2081_v25  ;;  %v2006_v0 = vpop.permute.xlu1 %2005 }
 0x5f9   : > { %v2063_v6 = vsel %vm1977_vm3, %v2006_v0, 0.0 }
 0x5fa   : > { %v2079_v55 = vadd.f32 %v2063_v6, %v3496_v52  ;;  %v1860_v52 = vsel %vm1768_vm2, %v1827_v20, 0.0 }
 0x5fb   : > { %v1876_v60 = vadd.f32 %v1860_v52, %v1731_v16 }
 0x5fc   : > { %2095 = vst [vmem:[%s3537_s23 + $0x28] sm:$0xff] %v2079_v55 }
 0x600   : > { %v2031_v27 = vpop.permute.xlu0 %2030 }
 0x601   : > { %v2068_v23 = vsel %vm1977_vm3, %v2031_v27, 0.0 }
 0x602   : > { %v2084_v62 = vadd.f32 %v2068_v23, %v1875_v18 }
 0x604   : > { %2100 = vst [vmem:[%s3537_s23 + $0x50] sm:$0xff] %v2084_v62  ;;  %v2021_v37 = vpop.permute.xlu0 %2020 }
 0x605   : > { %v2066_v17 = vsel %vm1977_vm3, %v2021_v37, 0.0 }
 0x606   : > { %v2082_v48 = vadd.f32 %v2066_v17, %v3510_v58 }
 0x608   : > { %2098 = vst [vmem:[%s3537_s23 + $0x40] sm:$0xff] %v2082_v48 }
 0x60c   : > { %v2036_v19 = vpop.permute.xlu1 %2035 }
 0x60d   : > { %v2069_v41 = vsel %vm1977_vm3, %v2036_v19, 0.0 }
 0x60e   : > { %v2085_v22 = vadd.f32 %v2069_v41, %v1876_v60 }
 0x610   : > { %2101 = vst [vmem:[%s3537_s23 + $0x58] sm:$0xff] %v2085_v22  ;;  %v2026_v54 = vpop.permute.xlu1 %2025 }
 0x611   : > { %v2067_v58 = vsel %vm1977_vm3, %v2026_v54, 0.0 }
 0x612   : > { %v2083_v18 = vadd.f32 %v2067_v58, %v1874_v12 }
 0x614   : > { %2099 = vst [vmem:[%s3537_s23 + $0x48] sm:$0xff] %v2083_v18 }
 0x61b   : > { %v2041_v21 = vpop.permute.xlu0 %2040 }
 0x61c   : > { %v2070_v34 = vsel %vm1977_vm3, %v2041_v21, 0.0 }
 0x61d   : > { %v2086_v33 = vadd.f32 %v2070_v34, %v3526_v45 }
 0x61f   : > { %2102 = vst [vmem:[%s3537_s23 + $0x60] sm:$0xff] %v2086_v33  ;;  %v2051_v28 = vpop.permute.xlu0 %2050 }
 0x620   : > { %v2072_v36 = vsel %vm1977_vm3, %v2051_v28, 0.0 }
 0x621   : > { %v2088_v9 = vadd.f32 %v2072_v36, %v3520_v30 }
 0x623   : > { %2104 = vst [vmem:[%s3537_s23 + $0x70] sm:$0xff] %v2088_v9 }
 0x62f   : > { %v2046_v56 = vpop.permute.xlu1 %2045 }
 0x630   : > { %v2071_v14 = vsel %vm1977_vm3, %v2046_v56, 0.0 }
 0x631   : > { %v2087_v15 = vadd.f32 %v2071_v14, %v1878_v47 }
 0x633   : > { %2103 = vst [vmem:[%s3537_s23 + $0x68] sm:$0xff] %v2087_v15  ;;  %v2056_v3 = vpop.permute.xlu1 %2055 }
 0x634   : > { %v2073_v59 = vsel %vm1977_vm3, %v2056_v3, 0.0 }
 0x635   : > { %v2089_v12 = vadd.f32 %v2073_v59, %v1880_v10 }
 0x637   : > { %2105 = vst [vmem:[%s3537_s23 + $0x78] sm:$0xff] %v2089_v12 }
 0x638 PF: > { %s18_s27 = sadd.s32 1, %s2480_s27  }
 0x639   : > { %p15_p4 = scmp.ge.s32.totalorder %s18_s27, 4  }
 0x63b   :  { %17 = sbr.rel (!%p15_p4) target bundleno = 1 (0x1), region = 85 }

</bundles_post_ra>
